<compile_context>
chip_gen: v6e
topology: v6e:2x2x1
jax: 0.10.0
libtpu: 0.0.40
codegen_flags: <defaults>
</compile_context>

<pallas_src>
import functools

import jax
import jax.numpy as jnp
import numpy as np
from jax.experimental import pallas as pl
from jax.experimental.pallas import tpu as pltpu

H = 128  # GRU hidden size (fixed by the module)


# ----------------------------- Pallas kernel -------------------------------- #
def actor_kernel(x_ref, wih_ref, whh_ref, bcomb_ref, bhhn_ref,
                 w1_ref, b1_ref, w2_ref, b2_ref, whead_ref, bhead_ref,
                 mred_ref, esel_ref, cash1h_ref,
                 action_ref, h_out_ref, *, inv_b, bp):
    TB = x_ref.shape[0]
    T = TB // bp

    # (1) Input projection hoisted out of the recurrence: ONE matmul for all
    #     T steps and all assets, kept entirely in vregs (no VMEM round-trip).
    #     bih (+ bhh for the r/z gates) is pre-folded into bcomb.
    gi = jnp.dot(x_ref[...], wih_ref[...],
                 preferred_element_type=jnp.float32) + bcomb_ref[...]     # (T*Bp, 3H) f32

    whh = whh_ref[...]      # (H, 3H) bf16, loop-invariant (shared across assets)
    bhh_n = bhhn_ref[...]   # (1, H)  f32 (n-gate hidden bias, needed under r*)

    # (2) Serial GRU recurrence, statically unrolled.  h is carried in f32 vregs
    #     (precision vs. the f32 reference); the bf16 cast for the next matmul
    #     LHS is done once per step.  Step 0 (h0 == 0) issues no matmul.
    gi0 = gi[0:bp, :]
    rz = jax.nn.sigmoid(gi0[:, :2 * H])                 # one EUP pass for r and z
    r, z = rz[:, :H], rz[:, H:]
    n = jnp.tanh(gi0[:, 2 * H:] + r * bhh_n)
    h = (1.0 - z) * n
    h_bf16 = h.astype(jnp.bfloat16)
    seq_rows = [h]

    for t in range(1, T):
        gi_t = gi[t * bp:(t + 1) * bp, :]                                 # vreg-aligned slice
        gh = jnp.dot(h_bf16, whh, preferred_element_type=jnp.float32)     # (Bp, 3H)
        rz = jax.nn.sigmoid(gi_t[:, :2 * H] + gh[:, :2 * H])              # fused r,z sigmoid
        r, z = rz[:, :H], rz[:, H:]
        n = jnp.tanh(gi_t[:, 2 * H:] + r * (gh[:, 2 * H:] + bhh_n))
        h = (1.0 - z) * n + z * h
        h_bf16 = h.astype(jnp.bfloat16)
        seq_rows.append(h)

    h_out_ref[...] = h

    # (3) MLP heads over all (t, asset) rows at once (bf16 MXU inputs, f32 acc).
    #     f32 sublane concat is free (each block = one vreg); the single bf16
    #     cast pass is off the serial critical path.
    seq = jnp.concatenate(seq_rows, axis=0).astype(jnp.bfloat16)          # (T*Bp, H)
    s1 = jnp.maximum(jnp.dot(seq, w1_ref[...],
                             preferred_element_type=jnp.float32) + b1_ref[...], 0.0)
    s2 = jnp.maximum(jnp.dot(s1.astype(jnp.bfloat16), w2_ref[...],
                             preferred_element_type=jnp.float32) + b2_ref[...], 0.0)
    logits = jax.nn.sigmoid(jnp.dot(s2.astype(jnp.bfloat16), whead_ref[...],
                                    preferred_element_type=jnp.float32) + bhead_ref[...])
    act_col = logits[:, 0:1]        # (T*Bp, 1) f32 — kept f32 (tiny; no quantization)
    cash_col = logits[:, 1:2]       # (T*Bp, 1) f32

    # (4) Rearrange (t,b)-rows -> (T, lanes) with tiny f32 0/1 selection matmuls
    #     (padded assets masked out), normalize exactly, one lane-dense store.
    mred = mred_ref[...]                                                  # (T, T*Bp) f32
    act_t = jnp.dot(mred, esel_ref[...] * act_col,
                    preferred_element_type=jnp.float32)                   # (T, OUT)
    cash_mean = jnp.dot(mred, cash_col,
                        preferred_element_type=jnp.float32) * inv_b       # (T, 1)
    scaled = (1.0 - cash_mean) * act_t                                    # (T, OUT)
    full = scaled + cash1h_ref[...] * cash_mean                           # add cash column
    denom = jnp.sum(scaled, axis=-1, keepdims=True) + cash_mean + 1e-10
    action_ref[...] = full / denom          # exact divide: rows sum to exactly 1


# ------------------------------ JAX wrapper ---------------------------------- #
def actor_forward(state, p):
    """state: (b_dim, T, s_dim) f32 -> (action (T, b_dim+1), h (1, b_dim, 128))."""
    B, T, S = state.shape
    Bp = ((B + 7) // 8) * 8                # assets padded to a sublane multiple
    OUT = ((B + 1 + 127) // 128) * 128     # lane-dense padded action width

    # Shared (NOT block-diagonal) weights; matmul operands in bf16, biases f32.
    wih = jnp.asarray(p['Wih'].T, jnp.bfloat16)                           # (S, 3H)
    whh = jnp.asarray(p['Whh'].T, jnp.bfloat16)                           # (H, 3H)
    bcomb = (p['bih'] + jnp.concatenate(
        [p['bhh'][:2 * H], jnp.zeros((H,), jnp.float32)])).reshape(1, 3 * H)
    bhh_n = p['bhh'][2 * H:].reshape(1, H)
    w1 = jnp.asarray(p['W1'].T, jnp.bfloat16)                             # (128, 128)
    b1 = p['b1'].reshape(1, 128)
    w2 = jnp.asarray(p['W2'].T, jnp.bfloat16)                             # (128, 64)
    b2 = p['b2'].reshape(1, 64)
    whead = jnp.asarray(jnp.concatenate([p['Wp'].T, p['Wc'].T], axis=1),
                        jnp.bfloat16)                                     # (64, 2)
    bhead = jnp.concatenate([p['bp'], p['bc']]).reshape(1, 2)

    # Inputs: time-major, assets on sublanes, zero-padded to Bp.
    x_tb = jnp.transpose(state, (1, 0, 2))                                # (T, B, S)
    x_flat = jnp.pad(x_tb, ((0, 0), (0, Bp - B), (0, 0))) \
                .reshape(T * Bp, S).astype(jnp.bfloat16)

    # Static f32 selection matrices for the output rearrangement / masking
    # (kept f32 per perf review: tiny matmuls, no bf16 quantization of action).
    rows = np.arange(T * Bp)
    blk, lane = rows // Bp, rows % Bp
    mred_np = ((blk[None, :] == np.arange(T)[:, None]) &
               (lane[None, :] < B)).astype(np.float32)                    # (T, T*Bp)
    esel_np = ((lane[:, None] == np.arange(OUT)[None, :]) &
               (lane[:, None] < B)).astype(np.float32)                    # (T*Bp, OUT)
    cash1h_np = np.zeros((1, OUT), np.float32)
    cash1h_np[0, B] = 1.0
    mred = jnp.asarray(mred_np)
    esel = jnp.asarray(esel_np)
    cash1h = jnp.asarray(cash1h_np)

    # Advisory cost estimate so XLA can schedule surrounding HLO around the call.
    flops = (2 * T * Bp * S * 3 * H                        # input projection
             + 2 * (T - 1) * Bp * H * 3 * H                # recurrence
             + 2 * T * Bp * (H * 128 + 128 * 64 + 64 * 2)  # MLP heads
             + 2 * T * (T * Bp) * (OUT + 1))               # output selection matmuls
    transcendentals = T * Bp * (3 * H + 2)
    bytes_accessed = (T * Bp * S * 2 + S * 3 * H * 2 + H * 3 * H * 2
                      + 4 * (3 * H + H + 128 + 64 + 2)
                      + 128 * 128 * 2 + 128 * 64 * 2 + 64 * 2 * 2
                      + 4 * (T * T * Bp + T * Bp * OUT + OUT)
                      + 4 * (T * OUT + Bp * H))

    vmem = pl.BlockSpec(memory_space=pltpu.MemorySpace.VMEM)
    kernel = functools.partial(actor_kernel, inv_b=float(1.0 / B), bp=Bp)
    action_pad, h_pad = pl.pallas_call(
        kernel,
        out_shape=(jax.ShapeDtypeStruct((T, OUT), jnp.float32),
                   jax.ShapeDtypeStruct((Bp, H), jnp.float32)),
        in_specs=[vmem] * 14,
        out_specs=(vmem, vmem),
        compiler_params=pltpu.CompilerParams(vmem_limit_bytes=32 * 1024 * 1024),
        cost_estimate=pl.CostEstimate(flops=int(flops),
                                      transcendentals=int(transcendentals),
                                      bytes_accessed=int(bytes_accessed)),
    )(x_flat, wih, whh, bcomb, bhh_n, w1, b1, w2, b2, whead, bhead,
      mred, esel, cash1h)

    action = action_pad[:, :B + 1]          # (T, b_dim + 1)
    h = h_pad[:B].reshape(1, B, H)          # (rnn_layers=1, b_dim, 128)
    return action, h


# --------------------------- deterministic params ---------------------------- #
def init_params(key, s_dim):
    ks = jax.random.split(key, 12)

    def u(k, shape, fan):
        bound = 1.0 / np.sqrt(fan)
        return jax.random.uniform(k, shape, jnp.float32, -bound, bound)

    return dict(
        Wih=u(ks[0], (3 * H, s_dim), H), Whh=u(ks[1], (3 * H, H), H),
        bih=u(ks[2], (3 * H,), H), bhh=u(ks[3], (3 * H,), H),
        W1=u(ks[4], (128, 128), 128), b1=u(ks[5], (128,), 128),
        W2=u(ks[6], (64, 128), 128), b2=u(ks[7], (64,), 128),
        Wp=u(ks[8], (1, 64), 64), bp=u(ks[9], (1,), 64),
        Wc=u(ks[10], (1, 64), 64), bc=u(ks[11], (1,), 64),
    )


# ---------------------------- pure-JAX reference ----------------------------- #
def actor_reference(state, p):
    B, T, S = state.shape
    h = jnp.zeros((B, H), jnp.float32)
    hs = []
    for t in range(T):
        x_t = state[:, t, :]
        gi = x_t @ p['Wih'].T + p['bih']
        gh = h @ p['Whh'].T + p['bhh']
        r = jax.nn.sigmoid(gi[:, :H] + gh[:, :H])
        z = jax.nn.sigmoid(gi[:, H:2 * H] + gh[:, H:2 * H])
        n = jnp.tanh(gi[:, 2 * H:] + r * gh[:, 2 * H:])
        h = (1 - z) * n + z * h
        hs.append(h)
    seq = jnp.stack(hs, axis=1)                                  # (B, T, H)
    s1 = jax.nn.relu(seq @ p['W1'].T + p['b1'])
    s2 = jax.nn.relu(s1 @ p['W2'].T + p['b2'])
    cash = jax.nn.sigmoid(s2 @ p['Wc'].T + p['bc'])              # (B, T, 1)
    act = jax.nn.sigmoid(s2 @ p['Wp'].T + p['bp'])[..., 0].T     # (T, B)
    cash_m = cash.mean(axis=0)                                   # (T, 1)
    action = jnp.concatenate([(1 - cash_m) * act, cash_m], axis=-1)
    action = action / (action.sum(axis=-1, keepdims=True) + 1e-10)
    return action, h[None]                                       # (T, B+1), (1, B, H)


if __name__ == "__main__":
    s_dim, b_dim, seq_len = 16, 4, 8
    key = jax.random.PRNGKey(0)
    pkey, xkey = jax.random.split(key)
    params = init_params(pkey, s_dim)
    state = jax.random.normal(xkey, (b_dim, seq_len, s_dim), jnp.float32)

    action, h = actor_forward(state, params)
    jax.block_until_ready((action, h))

    action_ref, h_ref = actor_reference(state, params)
    np.testing.assert_allclose(np.asarray(action), np.asarray(action_ref),
                               rtol=2e-2, atol=2e-2)
    np.testing.assert_allclose(np.asarray(h), np.asarray(h_ref),
                               rtol=2e-2, atol=2e-2)
    print("KERNEL_OK")
</pallas_src>

<mosaic_0001>
module attributes {stable_mosaic.version = 11 : i64} {
  func.func @actor_kernel(%arg0: memref<64x16xbf16, #tpu.memory_space<vmem>>, %arg1: memref<16x384xbf16, #tpu.memory_space<vmem>>, %arg2: memref<128x384xbf16, #tpu.memory_space<vmem>>, %arg3: memref<1x384xf32, #tpu.memory_space<vmem>>, %arg4: memref<1x128xf32, #tpu.memory_space<vmem>>, %arg5: memref<128x128xbf16, #tpu.memory_space<vmem>>, %arg6: memref<1x128xf32, #tpu.memory_space<vmem>>, %arg7: memref<128x64xbf16, #tpu.memory_space<vmem>>, %arg8: memref<1x64xf32, #tpu.memory_space<vmem>>, %arg9: memref<64x2xbf16, #tpu.memory_space<vmem>>, %arg10: memref<1x2xf32, #tpu.memory_space<vmem>>, %arg11: memref<8x64xf32, #tpu.memory_space<vmem>>, %arg12: memref<64x128xf32, #tpu.memory_space<vmem>>, %arg13: memref<1x128xf32, #tpu.memory_space<vmem>>, %arg14: memref<8x128xf32, #tpu.memory_space<vmem>>, %arg15: memref<8x128xf32, #tpu.memory_space<vmem>>) attributes {dimension_semantics = [], scalar_prefetch = 0 : i64, scratch_operands = 0 : i64, tpu.core_type = #tpu.core_type<tc>} {
    %c0 = arith.constant 0 : index
    %c0_0 = arith.constant 0 : index
    %0 = vector.load %arg0[%c0, %c0_0] : memref<64x16xbf16, #tpu.memory_space<vmem>>, vector<64x16xbf16>
    %c0_1 = arith.constant 0 : index
    %c0_2 = arith.constant 0 : index
    %1 = vector.load %arg1[%c0_1, %c0_2] : memref<16x384xbf16, #tpu.memory_space<vmem>>, vector<16x384xbf16>
    %cst = arith.constant dense<0.000000e+00> : vector<64x384xf32>
    %2 = tpu.matmul %0, %1, %cst {dimension_numbers = #tpu.dot_dimension_numbers<[1], [0], [0], [1], [0, 0, 1, 1], [], []>} : vector<64x16xbf16>, vector<16x384xbf16>, vector<64x384xf32> -> vector<64x384xf32>
    %c0_3 = arith.constant 0 : index
    %c0_4 = arith.constant 0 : index
    %3 = vector.load %arg3[%c0_3, %c0_4] : memref<1x384xf32, #tpu.memory_space<vmem>>, vector<1x384xf32>
    %4 = vector.broadcast %3 : vector<1x384xf32> to vector<64x384xf32>
    %5 = arith.addf %2, %4 : vector<64x384xf32>
    %c0_5 = arith.constant 0 : index
    %c0_6 = arith.constant 0 : index
    %6 = vector.load %arg2[%c0_5, %c0_6] : memref<128x384xbf16, #tpu.memory_space<vmem>>, vector<128x384xbf16>
    %c0_7 = arith.constant 0 : index
    %c0_8 = arith.constant 0 : index
    %7 = vector.load %arg4[%c0_7, %c0_8] : memref<1x128xf32, #tpu.memory_space<vmem>>, vector<1x128xf32>
    %8 = vector.extract_strided_slice %5 {offsets = [0, 0], sizes = [8, 384], strides = [1, 1]} : vector<64x384xf32> to vector<8x384xf32>
    %9 = vector.extract_strided_slice %8 {offsets = [0, 0], sizes = [8, 256], strides = [1, 1]} : vector<8x384xf32> to vector<8x256xf32>
    %10 = arith.negf %9 : vector<8x256xf32>
    %11 = math.exp %10 : vector<8x256xf32>
    %cst_9 = arith.constant 1.000000e+00 : f32
    %12 = vector.broadcast %cst_9 : f32 to vector<8x256xf32>
    %13 = arith.addf %12, %11 : vector<8x256xf32>
    %14 = arith.divf %12, %13 : vector<8x256xf32>
    %15 = vector.extract_strided_slice %14 {offsets = [0, 0], sizes = [8, 128], strides = [1, 1]} : vector<8x256xf32> to vector<8x128xf32>
    %16 = vector.extract_strided_slice %14 {offsets = [0, 128], sizes = [8, 128], strides = [1, 1]} : vector<8x256xf32> to vector<8x128xf32>
    %17 = vector.extract_strided_slice %8 {offsets = [0, 256], sizes = [8, 128], strides = [1, 1]} : vector<8x384xf32> to vector<8x128xf32>
    %18 = vector.broadcast %7 : vector<1x128xf32> to vector<8x128xf32>
    %19 = arith.mulf %15, %18 : vector<8x128xf32>
    %20 = arith.addf %17, %19 : vector<8x128xf32>
    %21 = math.tanh %20 : vector<8x128xf32>
    %cst_10 = arith.constant 1.000000e+00 : f32
    %22 = vector.broadcast %cst_10 : f32 to vector<8x128xf32>
    %23 = arith.subf %22, %16 : vector<8x128xf32>
    %24 = arith.mulf %23, %21 : vector<8x128xf32>
    %25 = arith.truncf %24 : vector<8x128xf32> to vector<8x128xbf16>
    %26 = vector.extract_strided_slice %5 {offsets = [8, 0], sizes = [8, 384], strides = [1, 1]} : vector<64x384xf32> to vector<8x384xf32>
    %cst_11 = arith.constant dense<0.000000e+00> : vector<8x384xf32>
    %27 = tpu.matmul %25, %6, %cst_11 {dimension_numbers = #tpu.dot_dimension_numbers<[1], [0], [0], [1], [0, 0, 1, 1], [], []>} : vector<8x128xbf16>, vector<128x384xbf16>, vector<8x384xf32> -> vector<8x384xf32>
    %28 = vector.extract_strided_slice %26 {offsets = [0, 0], sizes = [8, 256], strides = [1, 1]} : vector<8x384xf32> to vector<8x256xf32>
    %29 = vector.extract_strided_slice %27 {offsets = [0, 0], sizes = [8, 256], strides = [1, 1]} : vector<8x384xf32> to vector<8x256xf32>
    %30 = arith.addf %28, %29 : vector<8x256xf32>
    %31 = arith.negf %30 : vector<8x256xf32>
    %32 = math.exp %31 : vector<8x256xf32>
    %cst_12 = arith.constant 1.000000e+00 : f32
    %33 = vector.broadcast %cst_12 : f32 to vector<8x256xf32>
    %34 = arith.addf %33, %32 : vector<8x256xf32>
    %35 = arith.divf %33, %34 : vector<8x256xf32>
    %36 = vector.extract_strided_slice %35 {offsets = [0, 0], sizes = [8, 128], strides = [1, 1]} : vector<8x256xf32> to vector<8x128xf32>
    %37 = vector.extract_strided_slice %35 {offsets = [0, 128], sizes = [8, 128], strides = [1, 1]} : vector<8x256xf32> to vector<8x128xf32>
    %38 = vector.extract_strided_slice %26 {offsets = [0, 256], sizes = [8, 128], strides = [1, 1]} : vector<8x384xf32> to vector<8x128xf32>
    %39 = vector.extract_strided_slice %27 {offsets = [0, 256], sizes = [8, 128], strides = [1, 1]} : vector<8x384xf32> to vector<8x128xf32>
    %40 = vector.broadcast %7 : vector<1x128xf32> to vector<8x128xf32>
    %41 = arith.addf %39, %40 : vector<8x128xf32>
    %42 = arith.mulf %36, %41 : vector<8x128xf32>
    %43 = arith.addf %38, %42 : vector<8x128xf32>
    %44 = math.tanh %43 : vector<8x128xf32>
    %cst_13 = arith.constant 1.000000e+00 : f32
    %45 = vector.broadcast %cst_13 : f32 to vector<8x128xf32>
    %46 = arith.subf %45, %37 : vector<8x128xf32>
    %47 = arith.mulf %46, %44 : vector<8x128xf32>
    %48 = arith.mulf %37, %24 : vector<8x128xf32>
    %49 = arith.addf %47, %48 : vector<8x128xf32>
    %50 = arith.truncf %49 : vector<8x128xf32> to vector<8x128xbf16>
    %51 = vector.extract_strided_slice %5 {offsets = [16, 0], sizes = [8, 384], strides = [1, 1]} : vector<64x384xf32> to vector<8x384xf32>
    %cst_14 = arith.constant dense<0.000000e+00> : vector<8x384xf32>
    %52 = tpu.matmul %50, %6, %cst_14 {dimension_numbers = #tpu.dot_dimension_numbers<[1], [0], [0], [1], [0, 0, 1, 1], [], []>} : vector<8x128xbf16>, vector<128x384xbf16>, vector<8x384xf32> -> vector<8x384xf32>
    %53 = vector.extract_strided_slice %51 {offsets = [0, 0], sizes = [8, 256], strides = [1, 1]} : vector<8x384xf32> to vector<8x256xf32>
    %54 = vector.extract_strided_slice %52 {offsets = [0, 0], sizes = [8, 256], strides = [1, 1]} : vector<8x384xf32> to vector<8x256xf32>
    %55 = arith.addf %53, %54 : vector<8x256xf32>
    %56 = arith.negf %55 : vector<8x256xf32>
    %57 = math.exp %56 : vector<8x256xf32>
    %cst_15 = arith.constant 1.000000e+00 : f32
    %58 = vector.broadcast %cst_15 : f32 to vector<8x256xf32>
    %59 = arith.addf %58, %57 : vector<8x256xf32>
    %60 = arith.divf %58, %59 : vector<8x256xf32>
    %61 = vector.extract_strided_slice %60 {offsets = [0, 0], sizes = [8, 128], strides = [1, 1]} : vector<8x256xf32> to vector<8x128xf32>
    %62 = vector.extract_strided_slice %60 {offsets = [0, 128], sizes = [8, 128], strides = [1, 1]} : vector<8x256xf32> to vector<8x128xf32>
    %63 = vector.extract_strided_slice %51 {offsets = [0, 256], sizes = [8, 128], strides = [1, 1]} : vector<8x384xf32> to vector<8x128xf32>
    %64 = vector.extract_strided_slice %52 {offsets = [0, 256], sizes = [8, 128], strides = [1, 1]} : vector<8x384xf32> to vector<8x128xf32>
    %65 = vector.broadcast %7 : vector<1x128xf32> to vector<8x128xf32>
    %66 = arith.addf %64, %65 : vector<8x128xf32>
    %67 = arith.mulf %61, %66 : vector<8x128xf32>
    %68 = arith.addf %63, %67 : vector<8x128xf32>
    %69 = math.tanh %68 : vector<8x128xf32>
    %cst_16 = arith.constant 1.000000e+00 : f32
    %70 = vector.broadcast %cst_16 : f32 to vector<8x128xf32>
    %71 = arith.subf %70, %62 : vector<8x128xf32>
    %72 = arith.mulf %71, %69 : vector<8x128xf32>
    %73 = arith.mulf %62, %49 : vector<8x128xf32>
    %74 = arith.addf %72, %73 : vector<8x128xf32>
    %75 = arith.truncf %74 : vector<8x128xf32> to vector<8x128xbf16>
    %76 = vector.extract_strided_slice %5 {offsets = [24, 0], sizes = [8, 384], strides = [1, 1]} : vector<64x384xf32> to vector<8x384xf32>
    %cst_17 = arith.constant dense<0.000000e+00> : vector<8x384xf32>
    %77 = tpu.matmul %75, %6, %cst_17 {dimension_numbers = #tpu.dot_dimension_numbers<[1], [0], [0], [1], [0, 0, 1, 1], [], []>} : vector<8x128xbf16>, vector<128x384xbf16>, vector<8x384xf32> -> vector<8x384xf32>
    %78 = vector.extract_strided_slice %76 {offsets = [0, 0], sizes = [8, 256], strides = [1, 1]} : vector<8x384xf32> to vector<8x256xf32>
    %79 = vector.extract_strided_slice %77 {offsets = [0, 0], sizes = [8, 256], strides = [1, 1]} : vector<8x384xf32> to vector<8x256xf32>
    %80 = arith.addf %78, %79 : vector<8x256xf32>
    %81 = arith.negf %80 : vector<8x256xf32>
    %82 = math.exp %81 : vector<8x256xf32>
    %cst_18 = arith.constant 1.000000e+00 : f32
    %83 = vector.broadcast %cst_18 : f32 to vector<8x256xf32>
    %84 = arith.addf %83, %82 : vector<8x256xf32>
    %85 = arith.divf %83, %84 : vector<8x256xf32>
    %86 = vector.extract_strided_slice %85 {offsets = [0, 0], sizes = [8, 128], strides = [1, 1]} : vector<8x256xf32> to vector<8x128xf32>
    %87 = vector.extract_strided_slice %85 {offsets = [0, 128], sizes = [8, 128], strides = [1, 1]} : vector<8x256xf32> to vector<8x128xf32>
    %88 = vector.extract_strided_slice %76 {offsets = [0, 256], sizes = [8, 128], strides = [1, 1]} : vector<8x384xf32> to vector<8x128xf32>
    %89 = vector.extract_strided_slice %77 {offsets = [0, 256], sizes = [8, 128], strides = [1, 1]} : vector<8x384xf32> to vector<8x128xf32>
    %90 = vector.broadcast %7 : vector<1x128xf32> to vector<8x128xf32>
    %91 = arith.addf %89, %90 : vector<8x128xf32>
    %92 = arith.mulf %86, %91 : vector<8x128xf32>
    %93 = arith.addf %88, %92 : vector<8x128xf32>
    %94 = math.tanh %93 : vector<8x128xf32>
    %cst_19 = arith.constant 1.000000e+00 : f32
    %95 = vector.broadcast %cst_19 : f32 to vector<8x128xf32>
    %96 = arith.subf %95, %87 : vector<8x128xf32>
    %97 = arith.mulf %96, %94 : vector<8x128xf32>
    %98 = arith.mulf %87, %74 : vector<8x128xf32>
    %99 = arith.addf %97, %98 : vector<8x128xf32>
    %100 = arith.truncf %99 : vector<8x128xf32> to vector<8x128xbf16>
    %101 = vector.extract_strided_slice %5 {offsets = [32, 0], sizes = [8, 384], strides = [1, 1]} : vector<64x384xf32> to vector<8x384xf32>
    %cst_20 = arith.constant dense<0.000000e+00> : vector<8x384xf32>
    %102 = tpu.matmul %100, %6, %cst_20 {dimension_numbers = #tpu.dot_dimension_numbers<[1], [0], [0], [1], [0, 0, 1, 1], [], []>} : vector<8x128xbf16>, vector<128x384xbf16>, vector<8x384xf32> -> vector<8x384xf32>
    %103 = vector.extract_strided_slice %101 {offsets = [0, 0], sizes = [8, 256], strides = [1, 1]} : vector<8x384xf32> to vector<8x256xf32>
    %104 = vector.extract_strided_slice %102 {offsets = [0, 0], sizes = [8, 256], strides = [1, 1]} : vector<8x384xf32> to vector<8x256xf32>
    %105 = arith.addf %103, %104 : vector<8x256xf32>
    %106 = arith.negf %105 : vector<8x256xf32>
    %107 = math.exp %106 : vector<8x256xf32>
    %cst_21 = arith.constant 1.000000e+00 : f32
    %108 = vector.broadcast %cst_21 : f32 to vector<8x256xf32>
    %109 = arith.addf %108, %107 : vector<8x256xf32>
    %110 = arith.divf %108, %109 : vector<8x256xf32>
    %111 = vector.extract_strided_slice %110 {offsets = [0, 0], sizes = [8, 128], strides = [1, 1]} : vector<8x256xf32> to vector<8x128xf32>
    %112 = vector.extract_strided_slice %110 {offsets = [0, 128], sizes = [8, 128], strides = [1, 1]} : vector<8x256xf32> to vector<8x128xf32>
    %113 = vector.extract_strided_slice %101 {offsets = [0, 256], sizes = [8, 128], strides = [1, 1]} : vector<8x384xf32> to vector<8x128xf32>
    %114 = vector.extract_strided_slice %102 {offsets = [0, 256], sizes = [8, 128], strides = [1, 1]} : vector<8x384xf32> to vector<8x128xf32>
    %115 = vector.broadcast %7 : vector<1x128xf32> to vector<8x128xf32>
    %116 = arith.addf %114, %115 : vector<8x128xf32>
    %117 = arith.mulf %111, %116 : vector<8x128xf32>
    %118 = arith.addf %113, %117 : vector<8x128xf32>
    %119 = math.tanh %118 : vector<8x128xf32>
    %cst_22 = arith.constant 1.000000e+00 : f32
    %120 = vector.broadcast %cst_22 : f32 to vector<8x128xf32>
    %121 = arith.subf %120, %112 : vector<8x128xf32>
    %122 = arith.mulf %121, %119 : vector<8x128xf32>
    %123 = arith.mulf %112, %99 : vector<8x128xf32>
    %124 = arith.addf %122, %123 : vector<8x128xf32>
    %125 = arith.truncf %124 : vector<8x128xf32> to vector<8x128xbf16>
    %126 = vector.extract_strided_slice %5 {offsets = [40, 0], sizes = [8, 384], strides = [1, 1]} : vector<64x384xf32> to vector<8x384xf32>
    %cst_23 = arith.constant dense<0.000000e+00> : vector<8x384xf32>
    %127 = tpu.matmul %125, %6, %cst_23 {dimension_numbers = #tpu.dot_dimension_numbers<[1], [0], [0], [1], [0, 0, 1, 1], [], []>} : vector<8x128xbf16>, vector<128x384xbf16>, vector<8x384xf32> -> vector<8x384xf32>
    %128 = vector.extract_strided_slice %126 {offsets = [0, 0], sizes = [8, 256], strides = [1, 1]} : vector<8x384xf32> to vector<8x256xf32>
    %129 = vector.extract_strided_slice %127 {offsets = [0, 0], sizes = [8, 256], strides = [1, 1]} : vector<8x384xf32> to vector<8x256xf32>
    %130 = arith.addf %128, %129 : vector<8x256xf32>
    %131 = arith.negf %130 : vector<8x256xf32>
    %132 = math.exp %131 : vector<8x256xf32>
    %cst_24 = arith.constant 1.000000e+00 : f32
    %133 = vector.broadcast %cst_24 : f32 to vector<8x256xf32>
    %134 = arith.addf %133, %132 : vector<8x256xf32>
    %135 = arith.divf %133, %134 : vector<8x256xf32>
    %136 = vector.extract_strided_slice %135 {offsets = [0, 0], sizes = [8, 128], strides = [1, 1]} : vector<8x256xf32> to vector<8x128xf32>
    %137 = vector.extract_strided_slice %135 {offsets = [0, 128], sizes = [8, 128], strides = [1, 1]} : vector<8x256xf32> to vector<8x128xf32>
    %138 = vector.extract_strided_slice %126 {offsets = [0, 256], sizes = [8, 128], strides = [1, 1]} : vector<8x384xf32> to vector<8x128xf32>
    %139 = vector.extract_strided_slice %127 {offsets = [0, 256], sizes = [8, 128], strides = [1, 1]} : vector<8x384xf32> to vector<8x128xf32>
    %140 = vector.broadcast %7 : vector<1x128xf32> to vector<8x128xf32>
    %141 = arith.addf %139, %140 : vector<8x128xf32>
    %142 = arith.mulf %136, %141 : vector<8x128xf32>
    %143 = arith.addf %138, %142 : vector<8x128xf32>
    %144 = math.tanh %143 : vector<8x128xf32>
    %cst_25 = arith.constant 1.000000e+00 : f32
    %145 = vector.broadcast %cst_25 : f32 to vector<8x128xf32>
    %146 = arith.subf %145, %137 : vector<8x128xf32>
    %147 = arith.mulf %146, %144 : vector<8x128xf32>
    %148 = arith.mulf %137, %124 : vector<8x128xf32>
    %149 = arith.addf %147, %148 : vector<8x128xf32>
    %150 = arith.truncf %149 : vector<8x128xf32> to vector<8x128xbf16>
    %151 = vector.extract_strided_slice %5 {offsets = [48, 0], sizes = [8, 384], strides = [1, 1]} : vector<64x384xf32> to vector<8x384xf32>
    %cst_26 = arith.constant dense<0.000000e+00> : vector<8x384xf32>
    %152 = tpu.matmul %150, %6, %cst_26 {dimension_numbers = #tpu.dot_dimension_numbers<[1], [0], [0], [1], [0, 0, 1, 1], [], []>} : vector<8x128xbf16>, vector<128x384xbf16>, vector<8x384xf32> -> vector<8x384xf32>
    %153 = vector.extract_strided_slice %151 {offsets = [0, 0], sizes = [8, 256], strides = [1, 1]} : vector<8x384xf32> to vector<8x256xf32>
    %154 = vector.extract_strided_slice %152 {offsets = [0, 0], sizes = [8, 256], strides = [1, 1]} : vector<8x384xf32> to vector<8x256xf32>
    %155 = arith.addf %153, %154 : vector<8x256xf32>
    %156 = arith.negf %155 : vector<8x256xf32>
    %157 = math.exp %156 : vector<8x256xf32>
    %cst_27 = arith.constant 1.000000e+00 : f32
    %158 = vector.broadcast %cst_27 : f32 to vector<8x256xf32>
    %159 = arith.addf %158, %157 : vector<8x256xf32>
    %160 = arith.divf %158, %159 : vector<8x256xf32>
    %161 = vector.extract_strided_slice %160 {offsets = [0, 0], sizes = [8, 128], strides = [1, 1]} : vector<8x256xf32> to vector<8x128xf32>
    %162 = vector.extract_strided_slice %160 {offsets = [0, 128], sizes = [8, 128], strides = [1, 1]} : vector<8x256xf32> to vector<8x128xf32>
    %163 = vector.extract_strided_slice %151 {offsets = [0, 256], sizes = [8, 128], strides = [1, 1]} : vector<8x384xf32> to vector<8x128xf32>
    %164 = vector.extract_strided_slice %152 {offsets = [0, 256], sizes = [8, 128], strides = [1, 1]} : vector<8x384xf32> to vector<8x128xf32>
    %165 = vector.broadcast %7 : vector<1x128xf32> to vector<8x128xf32>
    %166 = arith.addf %164, %165 : vector<8x128xf32>
    %167 = arith.mulf %161, %166 : vector<8x128xf32>
    %168 = arith.addf %163, %167 : vector<8x128xf32>
    %169 = math.tanh %168 : vector<8x128xf32>
    %cst_28 = arith.constant 1.000000e+00 : f32
    %170 = vector.broadcast %cst_28 : f32 to vector<8x128xf32>
    %171 = arith.subf %170, %162 : vector<8x128xf32>
    %172 = arith.mulf %171, %169 : vector<8x128xf32>
    %173 = arith.mulf %162, %149 : vector<8x128xf32>
    %174 = arith.addf %172, %173 : vector<8x128xf32>
    %175 = arith.truncf %174 : vector<8x128xf32> to vector<8x128xbf16>
    %176 = vector.extract_strided_slice %5 {offsets = [56, 0], sizes = [8, 384], strides = [1, 1]} : vector<64x384xf32> to vector<8x384xf32>
    %cst_29 = arith.constant dense<0.000000e+00> : vector<8x384xf32>
    %177 = tpu.matmul %175, %6, %cst_29 {dimension_numbers = #tpu.dot_dimension_numbers<[1], [0], [0], [1], [0, 0, 1, 1], [], []>} : vector<8x128xbf16>, vector<128x384xbf16>, vector<8x384xf32> -> vector<8x384xf32>
    %178 = vector.extract_strided_slice %176 {offsets = [0, 0], sizes = [8, 256], strides = [1, 1]} : vector<8x384xf32> to vector<8x256xf32>
    %179 = vector.extract_strided_slice %177 {offsets = [0, 0], sizes = [8, 256], strides = [1, 1]} : vector<8x384xf32> to vector<8x256xf32>
    %180 = arith.addf %178, %179 : vector<8x256xf32>
    %181 = arith.negf %180 : vector<8x256xf32>
    %182 = math.exp %181 : vector<8x256xf32>
    %cst_30 = arith.constant 1.000000e+00 : f32
    %183 = vector.broadcast %cst_30 : f32 to vector<8x256xf32>
    %184 = arith.addf %183, %182 : vector<8x256xf32>
    %185 = arith.divf %183, %184 : vector<8x256xf32>
    %186 = vector.extract_strided_slice %185 {offsets = [0, 0], sizes = [8, 128], strides = [1, 1]} : vector<8x256xf32> to vector<8x128xf32>
    %187 = vector.extract_strided_slice %185 {offsets = [0, 128], sizes = [8, 128], strides = [1, 1]} : vector<8x256xf32> to vector<8x128xf32>
    %188 = vector.extract_strided_slice %176 {offsets = [0, 256], sizes = [8, 128], strides = [1, 1]} : vector<8x384xf32> to vector<8x128xf32>
    %189 = vector.extract_strided_slice %177 {offsets = [0, 256], sizes = [8, 128], strides = [1, 1]} : vector<8x384xf32> to vector<8x128xf32>
    %190 = vector.broadcast %7 : vector<1x128xf32> to vector<8x128xf32>
    %191 = arith.addf %189, %190 : vector<8x128xf32>
    %192 = arith.mulf %186, %191 : vector<8x128xf32>
    %193 = arith.addf %188, %192 : vector<8x128xf32>
    %194 = math.tanh %193 : vector<8x128xf32>
    %cst_31 = arith.constant 1.000000e+00 : f32
    %195 = vector.broadcast %cst_31 : f32 to vector<8x128xf32>
    %196 = arith.subf %195, %187 : vector<8x128xf32>
    %197 = arith.mulf %196, %194 : vector<8x128xf32>
    %198 = arith.mulf %187, %174 : vector<8x128xf32>
    %199 = arith.addf %197, %198 : vector<8x128xf32>
    %c0_32 = arith.constant 0 : index
    %c0_33 = arith.constant 0 : index
    %200 = vector.load %arg15[%c0_32, %c0_33] : memref<8x128xf32, #tpu.memory_space<vmem>>, vector<8x128xf32>
    tpu.vector_store %arg15[%c0_32, %c0_33], %199 {strides = array<i32>} : memref<8x128xf32, #tpu.memory_space<vmem>>, vector<8x128xf32>,
    %201 = tpu.concatenate %24, %49, %74, %99, %124, %149, %174, %199 in 0 : vector<8x128xf32>, vector<8x128xf32>, vector<8x128xf32>, vector<8x128xf32>, vector<8x128xf32>, vector<8x128xf32>, vector<8x128xf32>, vector<8x128xf32> -> vector<64x128xf32>
    %202 = arith.truncf %201 : vector<64x128xf32> to vector<64x128xbf16>
    %c0_34 = arith.constant 0 : index
    %c0_35 = arith.constant 0 : index
    %203 = vector.load %arg5[%c0_34, %c0_35] : memref<128x128xbf16, #tpu.memory_space<vmem>>, vector<128x128xbf16>
    %cst_36 = arith.constant dense<0.000000e+00> : vector<64x128xf32>
    %204 = tpu.matmul %202, %203, %cst_36 {dimension_numbers = #tpu.dot_dimension_numbers<[1], [0], [0], [1], [0, 0, 1, 1], [], []>} : vector<64x128xbf16>, vector<128x128xbf16>, vector<64x128xf32> -> vector<64x128xf32>
    %c0_37 = arith.constant 0 : index
    %c0_38 = arith.constant 0 : index
    %205 = vector.load %arg6[%c0_37, %c0_38] : memref<1x128xf32, #tpu.memory_space<vmem>>, vector<1x128xf32>
    %206 = vector.broadcast %205 : vector<1x128xf32> to vector<64x128xf32>
    %207 = arith.addf %204, %206 : vector<64x128xf32>
    %cst_39 = arith.constant 0.000000e+00 : f32
    %208 = vector.broadcast %cst_39 : f32 to vector<64x128xf32>
    %209 = arith.maximumf %207, %208 : vector<64x128xf32>
    %210 = arith.truncf %209 : vector<64x128xf32> to vector<64x128xbf16>
    %c0_40 = arith.constant 0 : index
    %c0_41 = arith.constant 0 : index
    %211 = vector.load %arg7[%c0_40, %c0_41] : memref<128x64xbf16, #tpu.memory_space<vmem>>, vector<128x64xbf16>
    %cst_42 = arith.constant dense<0.000000e+00> : vector<64x64xf32>
    %212 = tpu.matmul %210, %211, %cst_42 {dimension_numbers = #tpu.dot_dimension_numbers<[1], [0], [0], [1], [0, 0, 1, 1], [], []>} : vector<64x128xbf16>, vector<128x64xbf16>, vector<64x64xf32> -> vector<64x64xf32>
    %c0_43 = arith.constant 0 : index
    %c0_44 = arith.constant 0 : index
    %213 = vector.load %arg8[%c0_43, %c0_44] : memref<1x64xf32, #tpu.memory_space<vmem>>, vector<1x64xf32>
    %214 = vector.broadcast %213 : vector<1x64xf32> to vector<64x64xf32>
    %215 = arith.addf %212, %214 : vector<64x64xf32>
    %cst_45 = arith.constant 0.000000e+00 : f32
    %216 = vector.broadcast %cst_45 : f32 to vector<64x64xf32>
    %217 = arith.maximumf %215, %216 : vector<64x64xf32>
    %218 = arith.truncf %217 : vector<64x64xf32> to vector<64x64xbf16>
    %c0_46 = arith.constant 0 : index
    %c0_47 = arith.constant 0 : index
    %219 = vector.load %arg9[%c0_46, %c0_47] : memref<64x2xbf16, #tpu.memory_space<vmem>>, vector<64x2xbf16>
    %cst_48 = arith.constant dense<0.000000e+00> : vector<64x2xf32>
    %220 = tpu.matmul %218, %219, %cst_48 {dimension_numbers = #tpu.dot_dimension_numbers<[1], [0], [0], [1], [0, 0, 1, 1], [], []>} : vector<64x64xbf16>, vector<64x2xbf16>, vector<64x2xf32> -> vector<64x2xf32>
    %c0_49 = arith.constant 0 : index
    %c0_50 = arith.constant 0 : index
    %221 = vector.load %arg10[%c0_49, %c0_50] : memref<1x2xf32, #tpu.memory_space<vmem>>, vector<1x2xf32>
    %222 = vector.broadcast %221 : vector<1x2xf32> to vector<64x2xf32>
    %223 = arith.addf %220, %222 : vector<64x2xf32>
    %224 = arith.negf %223 : vector<64x2xf32>
    %225 = math.exp %224 : vector<64x2xf32>
    %cst_51 = arith.constant 1.000000e+00 : f32
    %226 = vector.broadcast %cst_51 : f32 to vector<64x2xf32>
    %227 = arith.addf %226, %225 : vector<64x2xf32>
    %228 = arith.divf %226, %227 : vector<64x2xf32>
    %229 = vector.extract_strided_slice %228 {offsets = [0, 0], sizes = [64, 1], strides = [1, 1]} : vector<64x2xf32> to vector<64x1xf32>
    %230 = vector.extract_strided_slice %228 {offsets = [0, 1], sizes = [64, 1], strides = [1, 1]} : vector<64x2xf32> to vector<64x1xf32>
    %c0_52 = arith.constant 0 : index
    %c0_53 = arith.constant 0 : index
    %231 = vector.load %arg11[%c0_52, %c0_53] : memref<8x64xf32, #tpu.memory_space<vmem>>, vector<8x64xf32>
    %c0_54 = arith.constant 0 : index
    %c0_55 = arith.constant 0 : index
    %232 = vector.load %arg12[%c0_54, %c0_55] : memref<64x128xf32, #tpu.memory_space<vmem>>, vector<64x128xf32>
    %233 = vector.broadcast %229 : vector<64x1xf32> to vector<64x128xf32>
    %234 = arith.mulf %232, %233 : vector<64x128xf32>
    %cst_56 = arith.constant dense<0.000000e+00> : vector<8x128xf32>
    %235 = tpu.matmul %231, %234, %cst_56 {dimension_numbers = #tpu.dot_dimension_numbers<[1], [0], [0], [1], [0, 0, 1, 1], [], []>} : vector<8x64xf32>, vector<64x128xf32>, vector<8x128xf32> -> vector<8x128xf32>
    %cst_57 = arith.constant dense<0.000000e+00> : vector<8x1xf32>
    %236 = tpu.matmul %231, %230, %cst_57 {dimension_numbers = #tpu.dot_dimension_numbers<[1], [0], [0], [1], [0, 0, 1, 1], [], []>} : vector<8x64xf32>, vector<64x1xf32>, vector<8x1xf32> -> vector<8x1xf32>
    %cst_58 = arith.constant 2.500000e-01 : f32
    %237 = vector.broadcast %cst_58 : f32 to vector<8x1xf32>
    %238 = arith.mulf %236, %237 : vector<8x1xf32>
    %cst_59 = arith.constant 1.000000e+00 : f32
    %239 = vector.broadcast %cst_59 : f32 to vector<8x1xf32>
    %240 = arith.subf %239, %238 : vector<8x1xf32>
    %241 = vector.broadcast %240 : vector<8x1xf32> to vector<8x128xf32>
    %242 = arith.mulf %241, %235 : vector<8x128xf32>
    %c0_60 = arith.constant 0 : index
    %c0_61 = arith.constant 0 : index
    %243 = vector.load %arg13[%c0_60, %c0_61] : memref<1x128xf32, #tpu.memory_space<vmem>>, vector<1x128xf32>
    %244 = vector.broadcast %243 : vector<1x128xf32> to vector<8x128xf32>
    %245 = vector.broadcast %238 : vector<8x1xf32> to vector<8x128xf32>
    %246 = arith.mulf %244, %245 : vector<8x128xf32>
    %247 = arith.addf %242, %246 : vector<8x128xf32>
    %cst_62 = arith.constant dense<0.000000e+00> : vector<8xf32>
    %248 = vector.multi_reduction <add>, %242, %cst_62 [1] : vector<8x128xf32> to vector<8xf32>
    %249 = vector.shape_cast %248 : vector<8xf32> to vector<8x1xf32>
    %250 = arith.addf %249, %238 : vector<8x1xf32>
    %cst_63 = arith.constant 1.000000e-10 : f32
    %251 = vector.broadcast %cst_63 : f32 to vector<8x1xf32>
    %252 = arith.addf %250, %251 : vector<8x1xf32>
    %253 = vector.broadcast %252 : vector<8x1xf32> to vector<8x128xf32>
    %254 = arith.divf %247, %253 : vector<8x128xf32>
    %c0_64 = arith.constant 0 : index
    %c0_65 = arith.constant 0 : index
    %255 = vector.load %arg14[%c0_64, %c0_65] : memref<8x128xf32, #tpu.memory_space<vmem>>, vector<8x128xf32>
    tpu.vector_store %arg14[%c0_64, %c0_65], %254 {strides = array<i32>} : memref<8x128xf32, #tpu.memory_space<vmem>>, vector<8x128xf32>,
    return
  }
}

</mosaic_0001>

<bundles_post_ra>
// kernel: tpu_custom_call.1
= control target key start
LH: loop header
LB: loop body
LE: loop exit
PB: predicated region body
PF: predicated region fallthrough
CT: control target
= control target key end

     0   :  { %21 = vsyncpa [#allocation3], 0  ;;  %s3391_s0 = inlined_call_operand.vmem [shape: bf16[64,16], index: 0, kind: input, shape index: {}]   ;;  %s3392_s1 = inlined_call_operand.hbm [shape: bf16[16,384], index: 1, kind: input, shape index: {}]   ;;  %s3393_s2 = inlined_call_operand.hbm [shape: bf16[128,384], index: 2, kind: input, shape index: {}]   ;;  %s3394_s3 = inlined_call_operand.vmem [shape: f32[1,384], index: 3, kind: input, shape index: {}]   ;;  %s3395_s4 = inlined_call_operand.vmem [shape: f32[1,128], index: 4, kind: input, shape index: {}]   ;;  %s3396_s5 = inlined_call_operand.vmem [shape: bf16[128,128], index: 5, kind: input, shape index: {}]   ;;  %s3397_s6 = inlined_call_operand.vmem [shape: f32[1,128], index: 6, kind: input, shape index: {}]   ;;  %s3398_s7 = inlined_call_operand.vmem [shape: bf16[128,64], index: 7, kind: input, shape index: {}]   ;;  %s3399_s8 = inlined_call_operand.vmem [shape: f32[1,64], index: 8, kind: input, shape index: {}]   ;;  %s3400_s9 = inlined_call_operand.vmem [shape: bf16[64,2], index: 9, kind: input, shape index: {}]   ;;  %s3401_s10 = inlined_call_operand.vmem [shape: f32[1,2], index: 10, kind: input, shape index: {}]   ;;  %s3402_s11 = inlined_call_operand.vmem [shape: f32[8,64], index: 11, kind: input, shape index: {}]   ;;  %s3403_s12 = inlined_call_operand.vmem [shape: f32[64,128], index: 12, kind: input, shape index: {}]   ;;  %s3404_s13 = inlined_call_operand.vmem [shape: f32[1,128], index: 13, kind: input, shape index: {}]   ;;  %s3405_s14 = inlined_call_operand.hbm [shape: f32[8,128], index: 14, kind: output, shape index: {0}]   ;;  %s3406_s15 = inlined_call_operand.hbm [shape: f32[8,128], index: 15, kind: output, shape index: {1}]  }
   0x1   :  { %22 = vsyncpa [#allocation6], 0 }
   0x2   :  { %23 = vsyncpa [#allocation4], 0 }
   0x3   :  { %24 = vsyncpa [#allocation9], 0  ;;  %s2701_s18 = smov [#allocation2]  }
   0x4   :  { %s32_s19 = sshll.u32 %s2701_s18, 4  ;;  %s33_s19 = int_to_ptr.vmem [resolvable:$true] %s32_s19 }
   0x5   :  { %s2621_s20 = scalar_lea.vmem %s33_s19, 384  ;;  %p2626_p1 = scmp.lt.s32.totalorder %s33_s19, %s33_s19 }
   0x6   :  { %p2622_p0 = scmp.ne.s32.totalorder %s33_s19, %s2621_s20  ;;  %p2627_p2 = scmp.lt.s32.totalorder %s2621_s20, %s2621_s20 }
   0x8   :  { %p2628_p3 = por %p2627_p2, %p2626_p1 }
   0xa   :  { %p2629_p4 = pnand %p2628_p3, %p2622_p0 }
   0xc   :  { %2632 = shalt.err (!%p2629_p4)
}
   0xd   :  { %s2702_s21 = smov 192   ;;  %s2703_s22 = smov 12  }
   0xe   :  { %38 = dma.hbm_to_vmem [thread:$0]  %s3392_s1, 384, %s33_s19, [#allocation3], %s2702_s21, %s2702_s21, %s2703_s22  }
   0xf   :  { %s2704_s25 = smov [#allocation5]  }
  0x10   :  { %s44_s26 = sshll.u32 %s2704_s25, 4  ;;  %s45_s26 = int_to_ptr.vmem [resolvable:$true] %s44_s26 }
  0x11   :  { %s2641_s27 = scalar_lea.vmem %s45_s26, 3072  ;;  %p2646_p6 = scmp.lt.s32.totalorder %s45_s26, %s45_s26 }
  0x12   :  { %p2642_p5 = scmp.ne.s32.totalorder %s45_s26, %s2641_s27  ;;  %p2647_p7 = scmp.lt.s32.totalorder %s2641_s27, %s2641_s27 }
  0x14   :  { %p2648_p8 = por %p2647_p7, %p2646_p6 }
  0x16   :  { %p2649_p9 = pnand %p2648_p8, %p2642_p5 }
  0x18   :  { %2652 = shalt.err (!%p2649_p9)
}
  0x19   :  { %50 = dma.hbm_to_vmem [thread:$0]  %s3393_s2, 3072, %s45_s26, [#allocation6], %s2702_s21, %s2702_s21, %s2703_s22  }
  0x1a   :  { %2693 = dma.done.wait [#allocation3], 384  }
  0x1b   :  { %2694 = vsyncadd [#allocation3], 4294966912 }
  0x1c   :  { %2695 = dma.done.wait [#allocation6], 3072  }
  0x1d   :  { %2696 = vsyncadd [#allocation6], 4294964224  ;;  %v3407_v0 = vmov 0   ;;  %v2438_v1 = vld [vmem:[#allocation2 + $0x4] ss:$12 sps:$4 sm:$0xff]   ;;  %vm145_vm0 = vcmask 130048   ;;  %v94_v33 = vlaneseq }
  0x1e   :  { %190 = vmatprep.mubr.bf16.mxu0 %v3407_v0  ;;  %2436 = vset.pattern.permute.xlu0 %v3407_v0  ;;  %v2440_v2 = vld [vmem:[#allocation2] ss:$12 sps:$4 sm:$0xff]   ;;  %v2442_v4 = vld [vmem:[#allocation2 + $0x8] ss:$12 sps:$4 sm:$0xff]   ;;  %v2812_v6 = vld [vmem:[#allocation5 + $0xac] ss:$12 sps:$4 sm:$0xff]  }
  0x1f   :  { %2437 = vset.pattern.permute.xlu1 %v3407_v0  ;;  %172 = vmatprep.subr.bf16.mxu0 %v2438_v1  ;;  %v2441_v3 = vld [vmem:[%s3391_s0] sm:$0xff]   ;;  %v2443_v5 = vld [vmem:[%s3391_s0 + $0x8] sm:$0xff]   ;;  %v3409_v9 = vmov 0.0   ;;  %v2827_v12 = vld [vmem:[#allocation5 + $0x98] ss:$12 sps:$4 sm:$0xff]   ;;  %vm2707_vm1 = vmmov 0  }
  0x20   :  { %173 = vmatpush1.bf16.msra.mxu0 %v2440_v2  ;;  %2176 = vmatprep.mubr.msk.bf16.mxu1 %vm145_vm0, %v2441_v3  ;;  %v2814_v7 = vld [vmem:[#allocation5 + $0xa8] ss:$12 sps:$4 sm:$0xff]   ;;  %v2816_v8 = vld [vmem:[#allocation5 + $0xb0] ss:$12 sps:$4 sm:$0xff]   ;;  %v2835_v14 = vld [vmem:[#allocation5 + $0x78] ss:$12 sps:$4 sm:$0xff]  }
  0x21   :  { %2174 = vmatprep.subr.bf16.mxu1 %v2442_v4  ;;  %481 = vmatprep.subr.bf16.mxu0 %v2812_v6  ;;  %v2822_v10 = vld [vmem:[#allocation5 + $0x94] ss:$12 sps:$4 sm:$0xff]   ;;  %v2825_v11 = vld [vmem:[#allocation5 + $0x90] ss:$12 sps:$4 sm:$0xff]   ;;  %v2858_v20 = vld [vmem:[#allocation5 + $0x4c] ss:$12 sps:$4 sm:$0xff]  }
  0x22   :  { %2175 = vmatpush3.bf16.msra.mxu1 %v2442_v4  ;;  %v2832_v13 = vld [vmem:[#allocation5 + $0x7c] ss:$12 sps:$4 sm:$0xff]   ;;  %v2837_v15 = vld [vmem:[#allocation5 + $0x80] ss:$12 sps:$4 sm:$0xff]   ;;  %v2846_v17 = vld [vmem:[#allocation5 + $0x64] ss:$12 sps:$4 sm:$0xff]  }
  0x23   :  { %1969 = vmatmul.mubr.msk.bf16.vlgmr.msra.gmra.mxu0 %vm145_vm0, %v2441_v3  ;;  %2184 = vmatprep.subr.bf16.mxu1 %v3409_v9  ;;  %v2456_v16 = vld [vmem:[%s3391_s0 + $0x10] sm:$0xff]   ;;  %v2849_v18 = vld [vmem:[#allocation5 + $0x60] ss:$12 sps:$4 sm:$0xff]   ;;  %v2851_v19 = vld [vmem:[#allocation5 + $0x68] ss:$12 sps:$4 sm:$0xff]   ;;  %v95_v34 = vshrl.u32 %v94_v33, 7 }
  0x24   :  { %200 = vmatprep.mubr.bf16.mxu0 %v3407_v0  ;;  %482 = vmatpush1.bf16.msra.mxu0 %v2814_v7  ;;  %v2861_v21 = vld [vmem:[#allocation5 + $0x48] ss:$12 sps:$4 sm:$0xff]   ;;  %v2863_v22 = vld [vmem:[#allocation5 + $0x50] ss:$12 sps:$4 sm:$0xff]   ;;  %v2465_v23 = vld [vmem:[%s3391_s0 + $0x18] sm:$0xff]   ;;  %vm1548_vm2 = vcmask 523264  }
  0x25   :  { %2177 = vmatmul.mubr.msk.bf16.vlgmr.msra.gmra.mxu1 %vm145_vm0, %v2443_v5  ;;  %483 = vmatprep.subr.bf16.mxu0 %v2822_v10  ;;  %v2868_v24 = vld [vmem:[#allocation5 + $0x34] ss:$12 sps:$4 sm:$0xff]   ;;  %v2873_v25 = vld [vmem:[#allocation5 + $0x30] ss:$12 sps:$4 sm:$0xff]   ;;  %v2875_v26 = vld [vmem:[#allocation5 + $0x38] ss:$12 sps:$4 sm:$0xff]  }
  0x26   :  { %2185 = vmatpush3.bf16.msra.mxu1 %v2816_v8  ;;  %2180 = vmatprep.mubr.msk.bf16.mxu1 %vm145_vm0, %v2456_v16  ;;  %v2879_v27 = vld [vmem:[#allocation5 + $0x1c] ss:$12 sps:$4 sm:$0xff]   ;;  %v2888_v28 = vld [vmem:[#allocation5 + $0x18] ss:$12 sps:$4 sm:$0xff]   ;;  %v2890_v29 = vld [vmem:[#allocation5 + $0x20] ss:$12 sps:$4 sm:$0xff]  }
  0x27   :  { %2186 = vmatprep.subr.bf16.mxu1 %v3409_v9  ;;  %v2894_v30 = vld [vmem:[#allocation5 + $0x4] ss:$12 sps:$4 sm:$0xff]   ;;  %v2898_v31 = vld [vmem:[#allocation5] ss:$12 sps:$4 sm:$0xff]   ;;  %v2900_v32 = vld [vmem:[#allocation5 + $0x8] ss:$12 sps:$4 sm:$0xff]  }
  0x28   :  { %484 = vmatpush1.bf16.msra.mxu0 %v2825_v11  ;;  %v96_v35 = vsub.s32 0, %v95_v34  ;;  %v92_v36 = vld [vmem:[%s3394_s3] sm:$0x7]  ;;  %v100_v38 = vsub.s32 1, %v95_v34  ;;  %v104_v48 = vsub.s32 2, %v95_v34 }
  0x29   :  { %485 = vmatprep.subr.bf16.mxu0 %v2832_v13  ;;  %v2924_v53 = vld [vmem:[%s3395_s4] ss:$0 sm:$0xff] }
  0x2a   :  { %2187 = vmatpush3.bf16.msra.mxu1 %v2827_v12  ;;  %v2911_v37 = vrot.slane %v92_v36, %v96_v35  ;;  %v2914_v42 = vrot.slane %v92_v36, %v100_v38  ;;  %v2919_v52 = vrot.slane %v92_v36, %v104_v48 }
  0x2b   :  { %1970 = vmatmul.mubr.msk.bf16.gmra.mxu0 %vm145_vm0, %v2443_v5  ;;  %2188 = vmatprep.subr.bf16.mxu1 %v3409_v9 }
  0x2c   :  { %210 = vmatprep.mubr.bf16.mxu0 %v3407_v0  ;;  %486 = vmatpush1.bf16.msra.mxu0 %v2835_v14 }
  0x2d   :  { %487 = vmatprep.subr.bf16.mxu0 %v2846_v17  ;;  %2181 = vmatmul.mubr.msk.bf16.gmra.mxu1 %vm145_vm0, %v2465_v23 }
  0x2e   :  { %2189 = vmatpush3.bf16.msra.mxu1 %v2837_v15  ;;  %2200 = vmatprep.mubr.msk.bf16.mxu1 %vm2707_vm1, %v3409_v9 }
  0x2f   :  { %2190 = vmatprep.subr.bf16.mxu1 %v3409_v9 }
  0x30   :  { %488 = vmatpush1.bf16.msra.mxu0 %v2849_v18 }
  0x31   :  { %489 = vmatprep.subr.bf16.mxu0 %v2858_v20 }
  0x32   :  { %2191 = vmatpush3.bf16.msra.mxu1 %v2851_v19 }
  0x33   :  { %1971 = vmatmul.mubr.msk.bf16.gmra.mxu0 %vm145_vm0, %v2456_v16  ;;  %2192 = vmatprep.subr.bf16.mxu1 %v3409_v9 }
  0x34   :  { %220 = vmatprep.mubr.bf16.mxu0 %v3407_v0  ;;  %490 = vmatpush1.bf16.msra.mxu0 %v2861_v21 }
  0x35   :  { %491 = vmatprep.subr.bf16.mxu0 %v2868_v24 }
  0x36   :  { %2193 = vmatpush3.bf16.msra.mxu1 %v2863_v22 }
  0x37   :  { %2194 = vmatprep.subr.bf16.mxu1 %v3409_v9 }
  0x38   :  { %492 = vmatpush1.bf16.msra.mxu0 %v2873_v25 }
  0x39   :  { %493 = vmatprep.subr.bf16.mxu0 %v2879_v27 }
  0x3a   :  { %2195 = vmatpush3.bf16.msra.mxu1 %v2875_v26 }
  0x3b   :  { %1972 = vmatmul.mubr.msk.bf16.gmra.mxu0 %vm145_vm0, %v2465_v23  ;;  %2196 = vmatprep.subr.bf16.mxu1 %v3409_v9 }
  0x3c   :  { %513 = vmatprep.mubr.bf16.mxu0 %v3407_v0  ;;  %494 = vmatpush1.bf16.msra.mxu0 %v2888_v28 }
  0x3d   :  { %495 = vmatprep.subr.bf16.mxu0 %v2894_v30 }
  0x3e   :  { %2197 = vmatpush3.bf16.msra.mxu1 %v2890_v29 }
  0x3f   :  { %2198 = vmatprep.subr.bf16.mxu1 %v3409_v9 }
  0x40   :  { %496 = vmatpush1.bf16.msra.mxu0 %v2898_v31 }
  0x41   :  { %585 = vmatprep.subr.bf16.mxu0 %v2812_v6 }
  0x42   :  { %2199 = vmatpush3.bf16.msra.mxu1 %v2900_v32 }
  0x43   :  { %2204 = vmatprep.subr.bf16.mxu1 %v3409_v9 }
  0xe3   :  { %v192_v39 = vpop.f32.mrf.mxu0 }
  0xe4   :  { %v193_v40 = vadd.f32 %v192_v39, %v2911_v37 }
  0xe5   :  { %v194_v43 = vpop.f32.mrf.mxu0  ;;  %v2917_v50 = vpop.f32.mrf.mxu1 }
  0xe6   :  { %v1977_v41 = vmul.f32 -1.442695, %v193_v40  ;;  %v195_v44 = vadd.f32 %v194_v43, %v2914_v42 }
  0xe7   :  { %v265_v55 = vpop.f32.mrf.mxu1  ;;  %v196_v1 = vpop.f32.mrf.mxu0 }
  0xe8   :  { %2498 = vpow2.f32 %v1977_v41  ;;  %v1978_v45 = vmul.f32 -1.442695, %v195_v44  ;;  %v266_v56 = vadd.f32 %v265_v55, %v2919_v52  ;;  %v197_v48 = vadd.f32 %v196_v1, %v2911_v37 }
  0xe9   :  { %v198_v2 = vpop.f32.mrf.mxu0  ;;  %v2979_v34 = vpop.f32.mrf.mxu1 }
  0xea   :  { %2500 = vpow2.f32 %v1978_v45 }
  0xeb   :  { %v2967_v3 = vpop.f32.mrf.mxu0  ;;  %v268_v36 = vpop.f32.mrf.mxu1 }
  0xed   :  { %v2969_v4 = vpop.f32.mrf.mxu0  ;;  %v2985_v39 = vpop.f32.mrf.mxu1 }
  0xef   :  { %v2971_v5 = vpop.f32.mrf.mxu0  ;;  %v2989_v41 = vpop.f32.mrf.mxu1 }
  0xf1   :  { %v2973_v16 = vpop.f32.mrf.mxu0  ;;  %v2993_v44 = vpop.f32.mrf.mxu1 }
  0xf2   :  { %3411 = vst [vmem:[#allocation14_spill] sm:$0xff] %v2993_v44 }
  0xf3   :  { %v2975_v23 = vpop.f32.mrf.mxu0 }
  0xf5   :  { %v2499_v46 = vpop.eup %2498  ;;  %v2977_v33 = vpop.f32.mrf.mxu0 }
  0xf6   :  { %v335_v47 = vadd.f32 1.0, %v2499_v46  ;;  %v2997_v46 = vpop.f32.mrf.mxu1 }
  0xf7   :  { %v2501_v49 = vpop.eup %2500  ;;  %v2981_v35 = vpop.f32.mrf.mxu0 }
  0xf8   :  { %2502 = vrcp.f32 %v335_v47  ;;  %v336_v51 = vadd.f32 1.0, %v2501_v49 }
  0xf9   :  { %v2983_v38 = vpop.f32.mrf.mxu0 }
  0xfa   :  { %2504 = vrcp.f32 %v336_v51 }
  0xfb   :  { %v2987_v40 = vpop.f32.mrf.mxu0 }
  0xfd   :  { %v2991_v43 = vpop.f32.mrf.mxu0 }
  0xff   :  { %v2995_v45 = vpop.f32.mrf.mxu0 }
 0x100   :  { %3412 = vst [vmem:[#allocation15_spill] sm:$0xff] %v2995_v45 }
 0x101   :  { %v2999_v47 = vpop.f32.mrf.mxu0 }
 0x102   :  { %3413 = vst [vmem:[#allocation16_spill] sm:$0xff] %v2999_v47 }
 0x105   :  { %v2503_v54 = vpop.eup %2502 }
 0x106   :  { %v347_v57 = vmul.f32 %v2503_v54, %v2924_v53 }
 0x107   :  { %v2505_v59 = vpop.eup %2504 }
 0x108   :  { %v348_v58 = vadd.f32 %v347_v57, %v266_v56  ;;  %v350_v60 = vsub.f32 1.0, %v2505_v59 }
 0x10a   :  { %2506 = vtanh.f32 %v348_v58 }
 0x117   :  { %v2507_v61 = vpop.eup %2506 }
 0x118   :  { %v2928_v62 = vmul.f32 %v2507_v61, %v350_v60  ;;  %v199_v60 = vadd.f32 %v198_v2, %v2914_v42 }
 0x11a   :  { %v352_v63 = vpack.c.bf16 %v2928_v62, %v2928_v62 }
 0x11c   :  { %514 = vmatmul.mubr.bf16.vlgmr.msra.gmra.mxu0 %v352_v63  ;;  %2201 = vmatmul.mubr.bf16.vlgmr.msra.gmra.mxu1 %v352_v63 }
 0x11d   :  { %586 = vmatpush1.bf16.msra.mxu0 %v2814_v7  ;;  %2205 = vmatpush3.bf16.msra.mxu1 %v2816_v8 }
 0x11e   :  { %587 = vmatprep.subr.bf16.mxu0 %v2822_v10  ;;  %2206 = vmatprep.subr.bf16.mxu1 %v3409_v9 }
 0x11f   :  { %617 = vmatprep.mubr.bf16.mxu0 %v3407_v0  ;;  %2220 = vmatprep.mubr.msk.bf16.mxu1 %vm2707_vm1, %v3409_v9 }
 0x121   :  { %588 = vmatpush1.bf16.msra.mxu0 %v2825_v11  ;;  %2207 = vmatpush3.bf16.msra.mxu1 %v2827_v12 }
 0x122   :  { %589 = vmatprep.subr.bf16.mxu0 %v2832_v13  ;;  %2208 = vmatprep.subr.bf16.mxu1 %v3409_v9 }
 0x125   :  { %590 = vmatpush1.bf16.msra.mxu0 %v2835_v14  ;;  %2209 = vmatpush3.bf16.msra.mxu1 %v2837_v15 }
 0x126   :  { %591 = vmatprep.subr.bf16.mxu0 %v2846_v17  ;;  %2210 = vmatprep.subr.bf16.mxu1 %v3409_v9 }
 0x129   :  { %592 = vmatpush1.bf16.msra.mxu0 %v2849_v18  ;;  %2211 = vmatpush3.bf16.msra.mxu1 %v2851_v19 }
 0x12a   :  { %593 = vmatprep.subr.bf16.mxu0 %v2858_v20  ;;  %2212 = vmatprep.subr.bf16.mxu1 %v3409_v9 }
 0x12d   :  { %594 = vmatpush1.bf16.msra.mxu0 %v2861_v21  ;;  %2213 = vmatpush3.bf16.msra.mxu1 %v2863_v22 }
 0x12e   :  { %595 = vmatprep.subr.bf16.mxu0 %v2868_v24  ;;  %2214 = vmatprep.subr.bf16.mxu1 %v3409_v9 }
 0x131   :  { %596 = vmatpush1.bf16.msra.mxu0 %v2873_v25  ;;  %2215 = vmatpush3.bf16.msra.mxu1 %v2875_v26 }
 0x132   :  { %597 = vmatprep.subr.bf16.mxu0 %v2879_v27  ;;  %2216 = vmatprep.subr.bf16.mxu1 %v3409_v9 }
 0x135   :  { %598 = vmatpush1.bf16.msra.mxu0 %v2888_v28  ;;  %2217 = vmatpush3.bf16.msra.mxu1 %v2890_v29 }
 0x136   :  { %599 = vmatprep.subr.bf16.mxu0 %v2894_v30  ;;  %2218 = vmatprep.subr.bf16.mxu1 %v3409_v9 }
 0x139   :  { %600 = vmatpush1.bf16.msra.mxu0 %v2898_v31  ;;  %2219 = vmatpush3.bf16.msra.mxu1 %v2900_v32 }
 0x13a   :  { %689 = vmatprep.subr.bf16.mxu0 %v2812_v6  ;;  %2224 = vmatprep.subr.bf16.mxu1 %v3409_v9 }
 0x1dc   :  { %v515_v49 = vpop.f32.mrf.mxu0  ;;  %v556_v51 = vpop.f32.mrf.mxu1 }
 0x1dd   :  { %v562_v54 = vadd.f32 %v515_v49, %v197_v48  ;;  %v576_v48 = vadd.f32 %v2924_v53, %v556_v51 }
 0x1de   :  { %v517_v55 = vpop.f32.mrf.mxu0  ;;  %v2202_v56 = vpop.f32.mrf.mxu1 }
 0x1df   :  { %v2004_v57 = vmul.f32 -1.442695, %v562_v54  ;;  %v563_v0 = vadd.f32 %v517_v55, %v199_v60  ;;  %v269_v54 = vadd.f32 %v268_v36, %v2919_v52  ;;  %v3414_v36 = vmov 0.0  }
 0x1e0   :  { %v519_v58 = vpop.f32.mrf.mxu0  ;;  %v559_v59 = vpop.f32.mrf.mxu1 }
 0x1e1   :  { %2508 = vpow2.f32 %v2004_v57  ;;  %v2005_v9 = vmul.f32 -1.442695, %v563_v0 }
 0x1e2   :  { %v520_v61 = vpop.f32.mrf.mxu0  ;;  %v2203_v63 = vpop.f32.mrf.mxu1 }
 0x1e3   :  { %2510 = vpow2.f32 %v2005_v9 }
 0x1ee   :  { %v2509_v44 = vpop.eup %2508 }
 0x1ef   :  { %v570_v47 = vadd.f32 1.0, %v2509_v44 }
 0x1f0   :  { %v2511_v1 = vpop.eup %2510 }
 0x1f1   :  { %2512 = vrcp.f32 %v570_v47  ;;  %v571_v45 = vadd.f32 1.0, %v2511_v1  ;;  %v203_v47 = vadd.f32 %v2967_v3, %v2911_v37 }
 0x1f3   :  { %2514 = vrcp.f32 %v571_v45  ;;  %v3415_v45 = vmov 0  }
 0x1fe   :  { %v2513_v49 = vpop.eup %2512 }
 0x1ff   :  { %v577_v56 = vmul.f32 %v2513_v49, %v576_v48 }
 0x200   :  { %v2515_v2 = vpop.eup %2514 }
 0x201   :  { %v578_v58 = vadd.f32 %v577_v56, %v269_v54  ;;  %v580_v57 = vsub.f32 1.0, %v2515_v2  ;;  %v582_v0 = vmul.f32 %v2515_v2, %v2928_v62  ;;  %v205_v56 = vadd.f32 %v2969_v4, %v2914_v42 }
 0x203   :  { %2516 = vtanh.f32 %v578_v58 }
 0x210   :  { %v2517_v59 = vpop.eup %2516 }
 0x211   :  { %v581_v55 = vmul.f32 %v2517_v59, %v580_v57 }
 0x213   :  { %v3006_v9 = vadd.f32 %v582_v0, %v581_v55 }
 0x215   :  { %v584_v44 = vpack.c.bf16 %v3006_v9, %v3006_v9 }
 0x217   :  { %618 = vmatmul.mubr.bf16.vlgmr.msra.gmra.mxu0 %v584_v44  ;;  %2221 = vmatmul.mubr.bf16.vlgmr.msra.gmra.mxu1 %v584_v44 }
 0x218   :  { %690 = vmatpush1.bf16.msra.mxu0 %v2814_v7  ;;  %2225 = vmatpush3.bf16.msra.mxu1 %v2816_v8 }
 0x219   :  { %691 = vmatprep.subr.bf16.mxu0 %v2822_v10  ;;  %2226 = vmatprep.subr.bf16.mxu1 %v3414_v36 }
 0x21a   :  { %721 = vmatprep.mubr.bf16.mxu0 %v3415_v45  ;;  %2240 = vmatprep.mubr.msk.bf16.mxu1 %vm2707_vm1, %v3414_v36 }
 0x21c   :  { %692 = vmatpush1.bf16.msra.mxu0 %v2825_v11  ;;  %2227 = vmatpush3.bf16.msra.mxu1 %v2827_v12 }
 0x21d   :  { %693 = vmatprep.subr.bf16.mxu0 %v2832_v13  ;;  %2228 = vmatprep.subr.bf16.mxu1 %v3414_v36 }
 0x220   :  { %694 = vmatpush1.bf16.msra.mxu0 %v2835_v14  ;;  %2229 = vmatpush3.bf16.msra.mxu1 %v2837_v15 }
 0x221   :  { %695 = vmatprep.subr.bf16.mxu0 %v2846_v17  ;;  %2230 = vmatprep.subr.bf16.mxu1 %v3414_v36 }
 0x224   :  { %696 = vmatpush1.bf16.msra.mxu0 %v2849_v18  ;;  %2231 = vmatpush3.bf16.msra.mxu1 %v2851_v19 }
 0x225   :  { %697 = vmatprep.subr.bf16.mxu0 %v2858_v20  ;;  %2232 = vmatprep.subr.bf16.mxu1 %v3414_v36 }
 0x228   :  { %698 = vmatpush1.bf16.msra.mxu0 %v2861_v21  ;;  %2233 = vmatpush3.bf16.msra.mxu1 %v2863_v22 }
 0x229   :  { %699 = vmatprep.subr.bf16.mxu0 %v2868_v24  ;;  %2234 = vmatprep.subr.bf16.mxu1 %v3414_v36 }
 0x22c   :  { %700 = vmatpush1.bf16.msra.mxu0 %v2873_v25  ;;  %2235 = vmatpush3.bf16.msra.mxu1 %v2875_v26 }
 0x22d   :  { %701 = vmatprep.subr.bf16.mxu0 %v2879_v27  ;;  %2236 = vmatprep.subr.bf16.mxu1 %v3414_v36 }
 0x230   :  { %702 = vmatpush1.bf16.msra.mxu0 %v2888_v28  ;;  %2237 = vmatpush3.bf16.msra.mxu1 %v2890_v29 }
 0x231   :  { %703 = vmatprep.subr.bf16.mxu0 %v2894_v30  ;;  %2238 = vmatprep.subr.bf16.mxu1 %v3414_v36 }
 0x234   :  { %704 = vmatpush1.bf16.msra.mxu0 %v2898_v31  ;;  %2239 = vmatpush3.bf16.msra.mxu1 %v2900_v32 }
 0x235   :  { %793 = vmatprep.subr.bf16.mxu0 %v2812_v6  ;;  %2244 = vmatprep.subr.bf16.mxu1 %v3414_v36 }
 0x2d7   :  { %v619_v51 = vpop.f32.mrf.mxu0  ;;  %v660_v60 = vpop.f32.mrf.mxu1 }
 0x2d8   :  { %v666_v61 = vadd.f32 %v619_v51, %v203_v47  ;;  %v680_v47 = vadd.f32 %v2924_v53, %v660_v60 }
 0x2d9   :  { %v621_v63 = vpop.f32.mrf.mxu0  ;;  %v2222_v1 = vpop.f32.mrf.mxu1 }
 0x2da   :  { %v2006_v48 = vmul.f32 -1.442695, %v666_v61  ;;  %v667_v57 = vadd.f32 %v621_v63, %v205_v56  ;;  %v274_v61 = vadd.f32 %v2917_v50, %v2919_v52  ;;  %v207_v50 = vadd.f32 %v2971_v5, %v2911_v37 }
 0x2db   :  { %v623_v49 = vpop.f32.mrf.mxu0  ;;  %v663_v54 = vpop.f32.mrf.mxu1 }
 0x2dc   :  { %2518 = vpow2.f32 %v2006_v48  ;;  %v2007_v59 = vmul.f32 -1.442695, %v667_v57 }
 0x2dd   :  { %v624_v58 = vpop.f32.mrf.mxu0  ;;  %v2223_v2 = vpop.f32.mrf.mxu1 }
 0x2de   :  { %2520 = vpow2.f32 %v2007_v59 }
 0x2e9   :  { %v2519_v55 = vpop.eup %2518 }
 0x2ea   :  { %v674_v0 = vadd.f32 1.0, %v2519_v55 }
 0x2eb   :  { %v2521_v3 = vpop.eup %2520 }
 0x2ec   :  { %2522 = vrcp.f32 %v674_v0  ;;  %v675_v44 = vadd.f32 1.0, %v2521_v3 }
 0x2ee   :  { %2524 = vrcp.f32 %v675_v44 }
 0x2f9   :  { %v2523_v51 = vpop.eup %2522 }
 0x2fa   :  { %v681_v1 = vmul.f32 %v2523_v51, %v680_v47  ;;  %v209_v51 = vadd.f32 %v2973_v16, %v2914_v42 }
 0x2fb   :  { %v2525_v48 = vpop.eup %2524 }
 0x2fc   :  { %v682_v4 = vadd.f32 %v681_v1, %v274_v61  ;;  %v684_v49 = vsub.f32 1.0, %v2525_v48  ;;  %v686_v56 = vmul.f32 %v2525_v48, %v3006_v9 }
 0x2fe   :  { %2526 = vtanh.f32 %v682_v4 }
 0x30b   :  { %v2527_v63 = vpop.eup %2526 }
 0x30c   :  { %v685_v54 = vmul.f32 %v2527_v63, %v684_v49 }
 0x30e   :  { %v3053_v58 = vadd.f32 %v686_v56, %v685_v54 }
 0x310   :  { %v688_v2 = vpack.c.bf16 %v3053_v58, %v3053_v58 }
 0x312   :  { %722 = vmatmul.mubr.bf16.vlgmr.msra.gmra.mxu0 %v688_v2  ;;  %2241 = vmatmul.mubr.bf16.vlgmr.msra.gmra.mxu1 %v688_v2 }
 0x313   :  { %794 = vmatpush1.bf16.msra.mxu0 %v2814_v7  ;;  %2245 = vmatpush3.bf16.msra.mxu1 %v2816_v8 }
 0x314   :  { %795 = vmatprep.subr.bf16.mxu0 %v2822_v10  ;;  %2246 = vmatprep.subr.bf16.mxu1 %v3414_v36 }
 0x315   :  { %825 = vmatprep.mubr.bf16.mxu0 %v3415_v45  ;;  %2260 = vmatprep.mubr.msk.bf16.mxu1 %vm2707_vm1, %v3414_v36 }
 0x317   :  { %796 = vmatpush1.bf16.msra.mxu0 %v2825_v11  ;;  %2247 = vmatpush3.bf16.msra.mxu1 %v2827_v12 }
 0x318   :  { %797 = vmatprep.subr.bf16.mxu0 %v2832_v13  ;;  %2248 = vmatprep.subr.bf16.mxu1 %v3414_v36 }
 0x31b   :  { %798 = vmatpush1.bf16.msra.mxu0 %v2835_v14  ;;  %2249 = vmatpush3.bf16.msra.mxu1 %v2837_v15 }
 0x31c   :  { %799 = vmatprep.subr.bf16.mxu0 %v2846_v17  ;;  %2250 = vmatprep.subr.bf16.mxu1 %v3414_v36 }
 0x31f   :  { %800 = vmatpush1.bf16.msra.mxu0 %v2849_v18  ;;  %2251 = vmatpush3.bf16.msra.mxu1 %v2851_v19 }
 0x320   :  { %801 = vmatprep.subr.bf16.mxu0 %v2858_v20  ;;  %2252 = vmatprep.subr.bf16.mxu1 %v3414_v36 }
 0x323   :  { %802 = vmatpush1.bf16.msra.mxu0 %v2861_v21  ;;  %2253 = vmatpush3.bf16.msra.mxu1 %v2863_v22 }
 0x324   :  { %803 = vmatprep.subr.bf16.mxu0 %v2868_v24  ;;  %2254 = vmatprep.subr.bf16.mxu1 %v3414_v36 }
 0x327   :  { %804 = vmatpush1.bf16.msra.mxu0 %v2873_v25  ;;  %2255 = vmatpush3.bf16.msra.mxu1 %v2875_v26 }
 0x328   :  { %805 = vmatprep.subr.bf16.mxu0 %v2879_v27  ;;  %2256 = vmatprep.subr.bf16.mxu1 %v3414_v36 }
 0x32b   :  { %806 = vmatpush1.bf16.msra.mxu0 %v2888_v28  ;;  %2257 = vmatpush3.bf16.msra.mxu1 %v2890_v29 }
 0x32c   :  { %807 = vmatprep.subr.bf16.mxu0 %v2894_v30  ;;  %2258 = vmatprep.subr.bf16.mxu1 %v3414_v36 }
 0x32f   :  { %808 = vmatpush1.bf16.msra.mxu0 %v2898_v31  ;;  %2259 = vmatpush3.bf16.msra.mxu1 %v2900_v32 }
 0x330   :  { %897 = vmatprep.subr.bf16.mxu0 %v2812_v6  ;;  %2264 = vmatprep.subr.bf16.mxu1 %v3414_v36 }
 0x3d2   :  { %v723_v60 = vpop.f32.mrf.mxu0  ;;  %v764_v57 = vpop.f32.mrf.mxu1 }
 0x3d3   :  { %v770_v59 = vadd.f32 %v723_v60, %v207_v50  ;;  %v784_v56 = vadd.f32 %v2924_v53, %v764_v57  ;;  %v277_v50 = vadd.f32 %v2979_v34, %v2919_v52  ;;  %v213_v34 = vadd.f32 %v2975_v23, %v2911_v37 }
 0x3d4   :  { %v725_v55 = vpop.f32.mrf.mxu0  ;;  %v2242_v0 = vpop.f32.mrf.mxu1 }
 0x3d5   :  { %v2008_v3 = vmul.f32 -1.442695, %v770_v59  ;;  %v771_v4 = vadd.f32 %v725_v55, %v209_v51 }
 0x3d6   :  { %v727_v44 = vpop.f32.mrf.mxu0  ;;  %v767_v47 = vpop.f32.mrf.mxu1 }
 0x3d7   :  { %2528 = vpow2.f32 %v2008_v3  ;;  %v2009_v48 = vmul.f32 -1.442695, %v771_v4 }
 0x3d8   :  { %v728_v61 = vpop.f32.mrf.mxu0  ;;  %v2243_v1 = vpop.f32.mrf.mxu1 }
 0x3d9   :  { %2530 = vpow2.f32 %v2009_v48 }
 0x3e4   :  { %v2529_v49 = vpop.eup %2528 }
 0x3e5   :  { %v778_v63 = vadd.f32 1.0, %v2529_v49 }
 0x3e6   :  { %v2531_v5 = vpop.eup %2530 }
 0x3e7   :  { %2532 = vrcp.f32 %v778_v63  ;;  %v779_v54 = vadd.f32 1.0, %v2531_v5 }
 0x3e9   :  { %2534 = vrcp.f32 %v779_v54  ;;  %v215_v54 = vadd.f32 %v2977_v33, %v2914_v42 }
 0x3f4   :  { %v2533_v2 = vpop.eup %2532 }
 0x3f5   :  { %v785_v60 = vmul.f32 %v2533_v2, %v784_v56 }
 0x3f6   :  { %v2535_v59 = vpop.eup %2534 }
 0x3f7   :  { %v786_v16 = vadd.f32 %v785_v60, %v277_v50  ;;  %v788_v0 = vsub.f32 1.0, %v2535_v59  ;;  %v790_v44 = vmul.f32 %v2535_v59, %v3053_v58 }
 0x3f9   :  { %2536 = vtanh.f32 %v786_v16 }
 0x406   :  { %v2537_v55 = vpop.eup %2536 }
 0x407   :  { %v789_v3 = vmul.f32 %v2537_v55, %v788_v0 }
 0x409   :  { %v3100_v47 = vadd.f32 %v790_v44, %v789_v3  ;;  %v282_v44 = vadd.f32 %v2989_v41, %v2919_v52  ;;  %v217_v41 = vadd.f32 %v2981_v35, %v2911_v37 }
 0x40b   :  { %v792_v51 = vpack.c.bf16 %v3100_v47, %v3100_v47 }
 0x40d   :  { %826 = vmatmul.mubr.bf16.vlgmr.msra.gmra.mxu0 %v792_v51  ;;  %2261 = vmatmul.mubr.bf16.vlgmr.msra.gmra.mxu1 %v792_v51 }
 0x40e   :  { %898 = vmatpush1.bf16.msra.mxu0 %v2814_v7  ;;  %2265 = vmatpush3.bf16.msra.mxu1 %v2816_v8 }
 0x40f   :  { %899 = vmatprep.subr.bf16.mxu0 %v2822_v10  ;;  %2266 = vmatprep.subr.bf16.mxu1 %v3414_v36 }
 0x410   :  { %929 = vmatprep.mubr.bf16.mxu0 %v3415_v45  ;;  %2280 = vmatprep.mubr.msk.bf16.mxu1 %vm2707_vm1, %v3414_v36 }
 0x412   :  { %900 = vmatpush1.bf16.msra.mxu0 %v2825_v11  ;;  %2267 = vmatpush3.bf16.msra.mxu1 %v2827_v12 }
 0x413   :  { %901 = vmatprep.subr.bf16.mxu0 %v2832_v13  ;;  %2268 = vmatprep.subr.bf16.mxu1 %v3414_v36 }
 0x416   :  { %902 = vmatpush1.bf16.msra.mxu0 %v2835_v14  ;;  %2269 = vmatpush3.bf16.msra.mxu1 %v2837_v15 }
 0x417   :  { %903 = vmatprep.subr.bf16.mxu0 %v2846_v17  ;;  %2270 = vmatprep.subr.bf16.mxu1 %v3414_v36 }
 0x41a   :  { %904 = vmatpush1.bf16.msra.mxu0 %v2849_v18  ;;  %2271 = vmatpush3.bf16.msra.mxu1 %v2851_v19 }
 0x41b   :  { %905 = vmatprep.subr.bf16.mxu0 %v2858_v20  ;;  %2272 = vmatprep.subr.bf16.mxu1 %v3414_v36 }
 0x41e   :  { %906 = vmatpush1.bf16.msra.mxu0 %v2861_v21  ;;  %2273 = vmatpush3.bf16.msra.mxu1 %v2863_v22 }
 0x41f   :  { %907 = vmatprep.subr.bf16.mxu0 %v2868_v24  ;;  %2274 = vmatprep.subr.bf16.mxu1 %v3414_v36 }
 0x422   :  { %908 = vmatpush1.bf16.msra.mxu0 %v2873_v25  ;;  %2275 = vmatpush3.bf16.msra.mxu1 %v2875_v26 }
 0x423   :  { %909 = vmatprep.subr.bf16.mxu0 %v2879_v27  ;;  %2276 = vmatprep.subr.bf16.mxu1 %v3414_v36 }
 0x426   :  { %910 = vmatpush1.bf16.msra.mxu0 %v2888_v28  ;;  %2277 = vmatpush3.bf16.msra.mxu1 %v2890_v29 }
 0x427   :  { %911 = vmatprep.subr.bf16.mxu0 %v2894_v30  ;;  %2278 = vmatprep.subr.bf16.mxu1 %v3414_v36 }
 0x42a   :  { %912 = vmatpush1.bf16.msra.mxu0 %v2898_v31  ;;  %2279 = vmatpush3.bf16.msra.mxu1 %v2900_v32 }
 0x42b   :  { %1001 = vmatprep.subr.bf16.mxu0 %v2812_v6  ;;  %2284 = vmatprep.subr.bf16.mxu1 %v3414_v36 }
 0x4cd   :  { %v827_v57 = vpop.f32.mrf.mxu0  ;;  %v868_v61 = vpop.f32.mrf.mxu1 }
 0x4ce   :  { %v874_v1 = vadd.f32 %v827_v57, %v213_v34  ;;  %v888_v55 = vadd.f32 %v2924_v53, %v868_v61 }
 0x4cf   :  { %v829_v4 = vpop.f32.mrf.mxu0  ;;  %v2262_v48 = vpop.f32.mrf.mxu1 }
 0x4d0   :  { %v2010_v49 = vmul.f32 -1.442695, %v874_v1  ;;  %v875_v50 = vadd.f32 %v829_v4, %v215_v54 }
 0x4d1   :  { %v831_v63 = vpop.f32.mrf.mxu0  ;;  %v871_v5 = vpop.f32.mrf.mxu1 }
 0x4d2   :  { %2538 = vpow2.f32 %v2010_v49  ;;  %v2011_v60 = vmul.f32 -1.442695, %v875_v50 }
 0x4d3   :  { %v832_v56 = vpop.f32.mrf.mxu0  ;;  %v2263_v2 = vpop.f32.mrf.mxu1 }
 0x4d4   :  { %2540 = vpow2.f32 %v2011_v60 }
 0x4df   :  { %v2539_v16 = vpop.eup %2538 }
 0x4e0   :  { %v882_v59 = vadd.f32 1.0, %v2539_v16 }
 0x4e1   :  { %v2541_v23 = vpop.eup %2540 }
 0x4e2   :  { %2542 = vrcp.f32 %v882_v59  ;;  %v883_v0 = vadd.f32 1.0, %v2541_v23  ;;  %v219_v59 = vadd.f32 %v2983_v38, %v2914_v42 }
 0x4e4   :  { %2544 = vrcp.f32 %v883_v0 }
 0x4ef   :  { %v2543_v3 = vpop.eup %2542 }
 0x4f0   :  { %v889_v51 = vmul.f32 %v2543_v3, %v888_v55 }
 0x4f1   :  { %v2545_v34 = vpop.eup %2544 }
 0x4f2   :  { %v890_v33 = vadd.f32 %v889_v51, %v282_v44  ;;  %v892_v57 = vsub.f32 1.0, %v2545_v34  ;;  %v894_v48 = vmul.f32 %v2545_v34, %v3100_v47 }
 0x4f4   :  { %2546 = vtanh.f32 %v890_v33 }
 0x501   :  { %v2547_v1 = vpop.eup %2546 }
 0x502   :  { %v893_v4 = vmul.f32 %v2547_v1, %v892_v57  ;;  %v285_v57 = vadd.f32 %v2997_v46, %v2919_v52 }
 0x504   :  { %v3147_v49 = vadd.f32 %v894_v48, %v893_v4 }
 0x506   :  { %v896_v63 = vpack.c.bf16 %v3147_v49, %v3147_v49 }
 0x508   :  { %930 = vmatmul.mubr.bf16.vlgmr.msra.gmra.mxu0 %v896_v63  ;;  %2281 = vmatmul.mubr.bf16.vlgmr.msra.gmra.mxu1 %v896_v63 }
 0x509   :  { %1002 = vmatpush1.bf16.msra.mxu0 %v2814_v7  ;;  %2285 = vmatpush3.bf16.msra.mxu1 %v2816_v8 }
 0x50a   :  { %1003 = vmatprep.subr.bf16.mxu0 %v2822_v10  ;;  %2286 = vmatprep.subr.bf16.mxu1 %v3414_v36 }
 0x50b   :  { %1033 = vmatprep.mubr.bf16.mxu0 %v3415_v45  ;;  %2300 = vmatprep.mubr.msk.bf16.mxu1 %vm2707_vm1, %v3414_v36 }
 0x50d   :  { %1004 = vmatpush1.bf16.msra.mxu0 %v2825_v11  ;;  %2287 = vmatpush3.bf16.msra.mxu1 %v2827_v12 }
 0x50e   :  { %1005 = vmatprep.subr.bf16.mxu0 %v2832_v13  ;;  %2288 = vmatprep.subr.bf16.mxu1 %v3414_v36 }
 0x511   :  { %1006 = vmatpush1.bf16.msra.mxu0 %v2835_v14  ;;  %2289 = vmatpush3.bf16.msra.mxu1 %v2837_v15 }
 0x512   :  { %1007 = vmatprep.subr.bf16.mxu0 %v2846_v17  ;;  %2290 = vmatprep.subr.bf16.mxu1 %v3414_v36 }
 0x515   :  { %1008 = vmatpush1.bf16.msra.mxu0 %v2849_v18  ;;  %2291 = vmatpush3.bf16.msra.mxu1 %v2851_v19 }
 0x516   :  { %1009 = vmatprep.subr.bf16.mxu0 %v2858_v20  ;;  %2292 = vmatprep.subr.bf16.mxu1 %v3414_v36 }
 0x519   :  { %1010 = vmatpush1.bf16.msra.mxu0 %v2861_v21  ;;  %2293 = vmatpush3.bf16.msra.mxu1 %v2863_v22 }
 0x51a   :  { %1011 = vmatprep.subr.bf16.mxu0 %v2868_v24  ;;  %2294 = vmatprep.subr.bf16.mxu1 %v3414_v36 }
 0x51d   :  { %1012 = vmatpush1.bf16.msra.mxu0 %v2873_v25  ;;  %2295 = vmatpush3.bf16.msra.mxu1 %v2875_v26 }
 0x51e   :  { %1013 = vmatprep.subr.bf16.mxu0 %v2879_v27  ;;  %2296 = vmatprep.subr.bf16.mxu1 %v3414_v36 }
 0x521   :  { %1014 = vmatpush1.bf16.msra.mxu0 %v2888_v28  ;;  %2297 = vmatpush3.bf16.msra.mxu1 %v2890_v29 }
 0x522   :  { %1015 = vmatprep.subr.bf16.mxu0 %v2894_v30  ;;  %2298 = vmatprep.subr.bf16.mxu1 %v3414_v36 }
 0x525   :  { %1016 = vmatpush1.bf16.msra.mxu0 %v2898_v31  ;;  %2299 = vmatpush3.bf16.msra.mxu1 %v2900_v32 }
 0x526   :  { %1105 = vmatprep.subr.bf16.mxu0 %v2812_v6  ;;  %2304 = vmatprep.subr.bf16.mxu1 %v3414_v36 }
 0x5c8   :  { %v931_v61 = vpop.f32.mrf.mxu0  ;;  %v972_v5 = vpop.f32.mrf.mxu1 }
 0x5c9   :  { %v978_v54 = vadd.f32 %v931_v61, %v217_v41  ;;  %v992_v33 = vadd.f32 %v2924_v53, %v972_v5 }
 0x5ca   :  { %v933_v56 = vpop.f32.mrf.mxu0  ;;  %v2282_v2 = vpop.f32.mrf.mxu1 }
 0x5cb   :  { %v2012_v50 = vmul.f32 -1.442695, %v978_v54  ;;  %v979_v6 = vadd.f32 %v933_v56, %v219_v59  ;;  %v2481_v59 = vld [vmem:[%s3396_s5 + $0x20] sm:$0xff]  }
 0x5cc   :  { %v935_v60 = vpop.f32.mrf.mxu0  ;;  %v975_v16 = vpop.f32.mrf.mxu1 }
 0x5cd   :  { %2548 = vpow2.f32 %v2012_v50  ;;  %v2013_v55 = vmul.f32 -1.442695, %v979_v6  ;;  %v2480_v16 = vld [vmem:[%s3396_s5 + $0x28] sm:$0xff]   ;;  %v1210_v6 = vpack.c.bf16 %v3100_v47, %v3053_v58  ;;  %v2489_v47 = vld [vmem:[%s3398_s7 + $0x20] sm:$0xff]  }
 0x5ce   :  { %v936_v23 = vpop.f32.mrf.mxu0  ;;  %v2283_v0 = vpop.f32.mrf.mxu1  ;;  %v2488_v58 = vld [vmem:[%s3398_s7 + $0x28] sm:$0xff]  }
 0x5cf   :  { %2550 = vpow2.f32 %v2013_v55  ;;  %v2484_v23 = vld [vmem:[%s3396_s5 + $0x8] sm:$0xff]   ;;  %v2485_v0 = vld [vmem:[%s3396_s5] sm:$0xff]  }
 0x5da   :  { %v2549_v3 = vpop.eup %2548 }
 0x5db   :  { %v986_v44 = vadd.f32 1.0, %v2549_v3  ;;  %v2486_v3 = vld [vmem:[%s3398_s7 + $0x38] sm:$0xff]  }
 0x5dc   :  { %v2551_v35 = vpop.eup %2550 }
 0x5dd   :  { %2552 = vrcp.f32 %v986_v44  ;;  %v987_v51 = vadd.f32 1.0, %v2551_v35  ;;  %v2487_v44 = vld [vmem:[%s3398_s7 + $0x30] sm:$0xff]  }
 0x5de   :  { %v2491_v35 = vld [vmem:[%s3398_s7 + $0x10] sm:$0xff]  }
 0x5df   :  { %2554 = vrcp.f32 %v987_v51  ;;  %v2492_v51 = vld [vmem:[%s3398_s7 + $0x8] sm:$0xff]  }
 0x5ea   :  { %v2553_v34 = vpop.eup %2552 }
 0x5eb   :  { %v993_v1 = vmul.f32 %v2553_v34, %v992_v33  ;;  %v2493_v33 = vld [vmem:[%s3398_s7] sm:$0xff]   ;;  %v2494_v34 = vld [vmem:[%s3400_s9 + $0x18] sm:$0xff]  }
 0x5ec   :  { %v2555_v4 = vpop.eup %2554 }
 0x5ed   :  { %v994_v38 = vadd.f32 %v993_v1, %v285_v57  ;;  %v996_v48 = vsub.f32 1.0, %v2555_v4  ;;  %v998_v61 = vmul.f32 %v2555_v4, %v3147_v49  ;;  %v3416_v57 = vld [vmem:[#allocation15_spill] sm:$0xff] }
 0x5ee   :  { %v227_v1 = vadd.f32 %v3416_v57, %v2911_v37 }
 0x5ef   :  { %2556 = vtanh.f32 %v994_v38 }
 0x5fc   :  { %v2557_v63 = vpop.eup %2556 }
 0x5fd   :  { %v997_v41 = vmul.f32 %v2557_v63, %v996_v48 }
 0x5ff   :  { %v3194_v54 = vadd.f32 %v998_v61, %v997_v41 }
 0x601   :  { %v1000_v56 = vpack.c.bf16 %v3194_v54, %v3194_v54  ;;  %v1211_v55 = vpack.c.bf16 %v3194_v54, %v3147_v49  ;;  %v2490_v49 = vld [vmem:[%s3398_s7 + $0x18] sm:$0xff]  }
 0x603   :  { %1034 = vmatmul.mubr.bf16.vlgmr.msra.gmra.mxu0 %v1000_v56  ;;  %2301 = vmatmul.mubr.bf16.vlgmr.msra.gmra.mxu1 %v1000_v56 }
 0x604   :  { %1106 = vmatpush1.bf16.msra.mxu0 %v2814_v7  ;;  %2305 = vmatpush3.bf16.msra.mxu1 %v2816_v8  ;;  %v2478_v7 = vld [vmem:[%s3396_s5 + $0x38] sm:$0xff]   ;;  %v223_v8 = vadd.f32 %v2987_v40, %v2911_v37 }
 0x605   :  { %1107 = vmatprep.subr.bf16.mxu0 %v2822_v10  ;;  %2306 = vmatprep.subr.bf16.mxu1 %v3414_v36 }
 0x606   :  { %1137 = vmatprep.mubr.bf16.mxu0 %v3415_v45  ;;  %2320 = vmatprep.mubr.msk.bf16.mxu1 %vm2707_vm1, %v3414_v36 }
 0x608   :  { %1108 = vmatpush1.bf16.msra.mxu0 %v2825_v11  ;;  %2307 = vmatpush3.bf16.msra.mxu1 %v2827_v12 }
 0x609   :  { %1109 = vmatprep.subr.bf16.mxu0 %v2832_v13  ;;  %2308 = vmatprep.subr.bf16.mxu1 %v3414_v36 }
 0x60c   :  { %1110 = vmatpush1.bf16.msra.mxu0 %v2835_v14  ;;  %2309 = vmatpush3.bf16.msra.mxu1 %v2837_v15 }
 0x60d   :  { %1111 = vmatprep.subr.bf16.mxu0 %v2846_v17  ;;  %2310 = vmatprep.subr.bf16.mxu1 %v3414_v36 }
 0x610   :  { %1112 = vmatpush1.bf16.msra.mxu0 %v2849_v18  ;;  %2311 = vmatpush3.bf16.msra.mxu1 %v2851_v19  ;;  %v225_v19 = vadd.f32 %v2991_v43, %v2914_v42 }
 0x611   :  { %1113 = vmatprep.subr.bf16.mxu0 %v2858_v20  ;;  %2312 = vmatprep.subr.bf16.mxu1 %v3414_v36 }
 0x614   :  { %1114 = vmatpush1.bf16.msra.mxu0 %v2861_v21  ;;  %2313 = vmatpush3.bf16.msra.mxu1 %v2863_v22 }
 0x615   :  { %1115 = vmatprep.subr.bf16.mxu0 %v2868_v24  ;;  %2314 = vmatprep.subr.bf16.mxu1 %v3414_v36 }
 0x618   :  { %1116 = vmatpush1.bf16.msra.mxu0 %v2873_v25  ;;  %2315 = vmatpush3.bf16.msra.mxu1 %v2875_v26 }
 0x619   :  { %1117 = vmatprep.subr.bf16.mxu0 %v2879_v27  ;;  %2316 = vmatprep.subr.bf16.mxu1 %v3414_v36 }
 0x61c   :  { %1118 = vmatpush1.bf16.msra.mxu0 %v2888_v28  ;;  %2317 = vmatpush3.bf16.msra.mxu1 %v2890_v29 }
 0x61d   :  { %1119 = vmatprep.subr.bf16.mxu0 %v2894_v30  ;;  %2318 = vmatprep.subr.bf16.mxu1 %v3414_v36 }
 0x620   :  { %1120 = vmatpush1.bf16.msra.mxu0 %v2898_v31  ;;  %2319 = vmatpush3.bf16.msra.mxu1 %v2900_v32  ;;  %v290_v31 = vadd.f32 %v2985_v39, %v2919_v52  ;;  %v1209_v39 = vpack.c.bf16 %v3006_v9, %v2928_v62  ;;  %v2482_v62 = vld [vmem:[%s3396_s5 + $0x18] sm:$0xff]   ;;  %v2483_v9 = vld [vmem:[%s3396_s5 + $0x10] sm:$0xff]  }
 0x621   :  { %2324 = vmatprep.subr.bf16.mxu0 %v2478_v7  ;;  %2348 = vmatprep.subr.bf16.mxu1 %v2486_v3 }
 0x6c3   :  { %v1035_v10 = vpop.f32.mrf.mxu0  ;;  %v1076_v11 = vpop.f32.mrf.mxu1 }
 0x6c4   :  { %v1082_v12 = vadd.f32 %v1035_v10, %v223_v8  ;;  %v1096_v29 = vadd.f32 %v2924_v53, %v1076_v11  ;;  %v2479_v53 = vld [vmem:[%s3396_s5 + $0x30] sm:$0xff]  }
 0x6c5   :  { %v1037_v13 = vpop.f32.mrf.mxu0  ;;  %v2302_v14 = vpop.f32.mrf.mxu1 }
 0x6c6   :  { %v2014_v15 = vmul.f32 -1.442695, %v1082_v12  ;;  %v1083_v22 = vadd.f32 %v1037_v13, %v225_v19  ;;  %v2612_v19 = vld [vmem:[%s3395_s4] ss:$0 sm:$0xff] }
 0x6c7   :  { %v1039_v17 = vpop.f32.mrf.mxu0  ;;  %v1079_v18 = vpop.f32.mrf.mxu1 }
 0x6c8   :  { %2558 = vpow2.f32 %v2014_v15  ;;  %v2015_v24 = vmul.f32 -1.442695, %v1083_v22 }
 0x6c9   :  { %v1040_v20 = vpop.f32.mrf.mxu0  ;;  %v2303_v21 = vpop.f32.mrf.mxu1 }
 0x6ca   :  { %2560 = vpow2.f32 %v2015_v24 }
 0x6d5   :  { %v2559_v25 = vpop.eup %2558 }
 0x6d6   :  { %v1090_v26 = vadd.f32 1.0, %v2559_v25 }
 0x6d7   :  { %v2561_v27 = vpop.eup %2560 }
 0x6d8   :  { %2562 = vrcp.f32 %v1090_v26  ;;  %v1091_v28 = vadd.f32 1.0, %v2561_v27  ;;  %v2018_v26 = vld [vmem:[%s3397_s6] ss:$0 sm:$0xff] }
 0x6da   :  { %2564 = vrcp.f32 %v1091_v28 }
 0x6e5   :  { %v2563_v30 = vpop.eup %2562 }
 0x6e6   :  { %v1097_v32 = vmul.f32 %v2563_v30, %v1096_v29 }
 0x6e7   :  { %v2565_v43 = vpop.eup %2564 }
 0x6e8   :  { %v1098_v40 = vadd.f32 %v1097_v32, %v290_v31  ;;  %v1100_v46 = vsub.f32 1.0, %v2565_v43  ;;  %v1102_v2 = vmul.f32 %v2565_v43, %v3194_v54 }
 0x6ea   :  { %2566 = vtanh.f32 %v1098_v40 }
 0x6f7   :  { %v2567_v45 = vpop.eup %2566 }
 0x6f8   :  { %v1101_v5 = vmul.f32 %v2567_v45, %v1100_v46 }
 0x6fa   :  { %v3242_v50 = vadd.f32 %v1102_v2, %v1101_v5 }
 0x6fc   :  { %v1104_v60 = vpack.c.bf16 %v3242_v50, %v3242_v50 }
 0x6fe   :  { %1138 = vmatmul.mubr.bf16.vlgmr.msra.gmra.mxu0 %v1104_v60  ;;  %2321 = vmatmul.mubr.bf16.vlgmr.msra.gmra.mxu1 %v1104_v60 }
 0x6ff   :  { %2325 = vmatpush3.bf16.msra.mxu0 %v2478_v7  ;;  %2340 = vmatprep.mubr.bf16.mxu0 %v1209_v39  ;;  %v3417_v7 = vld [vmem:[#allocation16_spill] sm:$0xff] }
 0x700   :  { %2326 = vmatprep.subr.bf16.mxu0 %v2479_v53  ;;  %2349 = vmatpush3.bf16.msra.mxu1 %v2486_v3  ;;  %v229_v8 = vadd.f32 %v3417_v7, %v2914_v42  ;;  %v3418_v42 = vld [vmem:[#allocation14_spill] sm:$0xff]  ;;  %v2027_v3 = vld [vmem:[%s3399_s8] ss:$0 sm:$0xff] }
 0x701   :  { %2350 = vmatprep.subr.bf16.mxu1 %v2487_v44  ;;  %v293_v24 = vadd.f32 %v3418_v42, %v2919_v52 }
 0x703   :  { %2327 = vmatpush3.bf16.msra.mxu0 %v2479_v53 }
 0x704   :  { %2328 = vmatprep.subr.bf16.mxu0 %v2480_v16  ;;  %2351 = vmatpush3.bf16.msra.mxu1 %v2487_v44 }
 0x705   :  { %2352 = vmatprep.subr.bf16.mxu1 %v2488_v58 }
 0x707   :  { %2329 = vmatpush3.bf16.msra.mxu0 %v2480_v16 }
 0x708   :  { %2330 = vmatprep.subr.bf16.mxu0 %v2481_v59  ;;  %2353 = vmatpush3.bf16.msra.mxu1 %v2488_v58 }
 0x709   :  { %2354 = vmatprep.subr.bf16.mxu1 %v2489_v47 }
 0x70b   :  { %2331 = vmatpush3.bf16.msra.mxu0 %v2481_v59 }
 0x70c   :  { %2332 = vmatprep.subr.bf16.mxu0 %v2482_v62  ;;  %2355 = vmatpush3.bf16.msra.mxu1 %v2489_v47 }
 0x70d   :  { %2356 = vmatprep.subr.bf16.mxu1 %v2490_v49 }
 0x70f   :  { %2333 = vmatpush3.bf16.msra.mxu0 %v2482_v62 }
 0x710   :  { %2334 = vmatprep.subr.bf16.mxu0 %v2483_v9  ;;  %2357 = vmatpush3.bf16.msra.mxu1 %v2490_v49 }
 0x711   :  { %2358 = vmatprep.subr.bf16.mxu1 %v2491_v35 }
 0x713   :  { %2335 = vmatpush3.bf16.msra.mxu0 %v2483_v9 }
 0x714   :  { %2336 = vmatprep.subr.bf16.mxu0 %v2484_v23  ;;  %2359 = vmatpush3.bf16.msra.mxu1 %v2491_v35 }
 0x715   :  { %2360 = vmatprep.subr.bf16.mxu1 %v2492_v51 }
 0x717   :  { %2337 = vmatpush3.bf16.msra.mxu0 %v2484_v23  ;;  %v2495_v23 = vld [vmem:[%s3400_s9 + $0x10] sm:$0xff]  }
 0x718   :  { %2338 = vmatprep.subr.bf16.mxu0 %v2485_v0  ;;  %2361 = vmatpush3.bf16.msra.mxu1 %v2492_v51 }
 0x719   :  { %2362 = vmatprep.subr.bf16.mxu1 %v2493_v33 }
 0x71b   :  { %2339 = vmatpush3.bf16.msra.mxu0 %v2485_v0  ;;  %v2496_v0 = vld [vmem:[%s3400_s9 + $0x8] sm:$0xff]  }
 0x71c   :  { %2363 = vmatpush3.bf16.msra.mxu1 %v2493_v33  ;;  %2372 = vmatprep.subr.bf16.mxu0 %v2494_v34 }
 0x71d   :  { %2388 = vmatprep.subr.mxu1 %v3414_v36 }
 0x71e   :  { %2341 = vmatmul.mubr.bf16.vlgmr.msra.gmra.mxu0 %v1210_v6  ;;  %v2497_v6 = vld [vmem:[%s3400_s9] sm:$0xff]  }
 0x71f   :  { %2344 = vmatprep.mubr.bf16.mxu0 %v1211_v55  ;;  %2373 = vmatpush3.bf16.msra.mxu0 %v2494_v34 }
 0x720   :  { %2374 = vmatprep.subr.bf16.mxu0 %v2495_v23 }
 0x723   :  { %2375 = vmatpush3.bf16.msra.mxu0 %v2495_v23 }
 0x724   :  { %2376 = vmatprep.subr.bf16.mxu0 %v2496_v0 }
 0x727   :  { %2377 = vmatpush3.bf16.msra.mxu0 %v2496_v0 }
 0x728   :  { %2378 = vmatprep.subr.bf16.mxu0 %v2497_v6 }
 0x72b   :  { %2379 = vmatpush3.bf16.msra.mxu0 %v2497_v6 }
 0x72c   :  { %2407 = vmatprep.subr.mxu0 %v3414_v36 }
 0x7be   :  { %v1139_v38 = vpop.f32.mrf.mxu0  ;;  %v1180_v4 = vpop.f32.mrf.mxu1 }
 0x7bf   :  { %v1186_v48 = vadd.f32 %v1139_v38, %v227_v1  ;;  %v1200_v20 = vadd.f32 %v2612_v19, %v1180_v4 }
 0x7c0   :  { %v1141_v63 = vpop.f32.mrf.mxu0  ;;  %v2322_v41 = vpop.f32.mrf.mxu1 }
 0x7c1   :  { %v2016_v61 = vmul.f32 -1.442695, %v1186_v48  ;;  %v1187_v12 = vadd.f32 %v1141_v63, %v229_v8 }
 0x7c2   :  { %v1143_v54 = vpop.f32.mrf.mxu0  ;;  %v1183_v56 = vpop.f32.mrf.mxu1 }
 0x7c3   :  { %2568 = vpow2.f32 %v2016_v61  ;;  %v2017_v13 = vmul.f32 -1.442695, %v1187_v12 }
 0x7c4   :  { %v1144_v10 = vpop.f32.mrf.mxu0  ;;  %v2323_v11 = vpop.f32.mrf.mxu1 }
 0x7c5   :  { %2570 = vpow2.f32 %v2017_v13 }
 0x7d0   :  { %v2569_v14 = vpop.eup %2568 }
 0x7d1   :  { %v1194_v15 = vadd.f32 1.0, %v2569_v14 }
 0x7d2   :  { %v2571_v37 = vpop.eup %2570 }
 0x7d3   :  { %2572 = vrcp.f32 %v1194_v15  ;;  %v1195_v17 = vadd.f32 1.0, %v2571_v37 }
 0x7d5   :  { %2574 = vrcp.f32 %v1195_v17 }
 0x7de   :  { %v2342_v18 = vpop.f32.mrf.mxu0 }
 0x7df   :  { %v1327_v31 = vadd.f32 %v2342_v18, %v2018_v26 }
 0x7e0   :  { %v2573_v21 = vpop.eup %2572  ;;  %v1318_v22 = vpop.f32.mrf.mxu0 }
 0x7e1   :  { %v1201_v25 = vmul.f32 %v2573_v21, %v1200_v20  ;;  %v1319_v29 = vadd.f32 %v2018_v26, %v1318_v22  ;;  %v1351_v5 = vmax.f32 %v1327_v31, 0.0 }
 0x7e2   :  { %v2343_v27 = vpop.f32.mrf.mxu0  ;;  %v2575_v60 = vpop.eup %2574 }
 0x7e3   :  { %v1202_v28 = vadd.f32 %v1201_v25, %v293_v24  ;;  %v1330_v30 = vadd.f32 %v2343_v27, %v2018_v26  ;;  %v1349_v46 = vmax.f32 %v1319_v29, 0.0  ;;  %v1204_v53 = vsub.f32 1.0, %v2575_v60 }
 0x7e4   :  { %v1321_v32 = vpop.f32.mrf.mxu0  ;;  %v1206_v59 = vmul.f32 %v2575_v60, %v3242_v50 }
 0x7e5   :  { %2576 = vtanh.f32 %v1202_v28  ;;  %v1322_v40 = vadd.f32 %v2018_v26, %v1321_v32  ;;  %v1352_v43 = vmax.f32 %v1330_v30, 0.0 }
 0x7e7   :  { %v1350_v45 = vmax.f32 %v1322_v40, 0.0  ;;  %v1358_v52 = vpack.c.bf16 %v1352_v43, %v1351_v5  ;;  %v2036_v43 = vld [vmem:[%s3401_s10] ss:$0 sm:$0xff]  ;;  %s2708_s10 = smov 127  }
 0x7e9   :  { %v1357_v2 = vpack.c.bf16 %v1350_v45, %v1349_v46 }
 0x7eb   :  { %2364 = vmatprep.mubr.bf16.mxu1 %v1357_v2 }
 0x7ec   :  { %2365 = vmatmul.mubr.bf16.vlgmr.msra.gmra.mxu1 %v1358_v52 }
 0x7f2   :  { %v2577_v39 = vpop.eup %2576 }
 0x7f3   :  { %v1205_v16 = vmul.f32 %v2577_v39, %v1204_v53 }
 0x7f5   :  { %v1207_v62 = vadd.f32 %v1206_v59, %v1205_v16 }
 0x7f7   :  { %v1212_v9 = vpack.c.bf16 %v1207_v62, %v3242_v50  ;;  %1208 = vst [vmem:[#allocation8] sm:$0xff] %v1207_v62 }
 0x7f9   :  { %2345 = vmatmul.mubr.bf16.gmra.mxu0 %v1212_v9 }
 0x8ac   :  { %v2366_v50 = vpop.f32.mrf.mxu1 }
 0x8ad   :  { %v1475_v49 = vadd.f32 %v2366_v50, %v2027_v3 }
 0x8ae   :  { %v1466_v55 = vpop.f32.mrf.mxu1 }
 0x8af   :  { %v1467_v58 = vadd.f32 %v2027_v3, %v1466_v55  ;;  %v1499_v1 = vmax.f32 %v1475_v49, 0.0 }
 0x8b0   :  { %v2367_v44 = vpop.f32.mrf.mxu1 }
 0x8b1   :  { %v1478_v47 = vadd.f32 %v2367_v44, %v2027_v3  ;;  %v1497_v34 = vmax.f32 %v1467_v58, 0.0 }
 0x8b2   :  { %v1469_v35 = vpop.f32.mrf.mxu1 }
 0x8b3   :  { %v1470_v51 = vadd.f32 %v2027_v3, %v1469_v35  ;;  %v1500_v33 = vmax.f32 %v1478_v47, 0.0 }
 0x8b5   :  { %v1498_v57 = vmax.f32 %v1470_v51, 0.0  ;;  %v1506_v4 = vpack.c.bf16 %v1500_v33, %v1499_v1 }
 0x8b7   :  { %v1505_v38 = vpack.c.bf16 %v1498_v57, %v1497_v34 }
 0x8b9   :  { %2380 = vmatprep.mubr.msk.bf16.mxu0 %vm1548_vm2, %v1505_v38  ;;  %v2346_v48 = vpop.f32.mrf.mxu0 }
 0x8ba   :  { %2381 = vmatmul.mubr.msk.bf16.vlgmr.msra.gmra.mxu0 %vm1548_vm2, %v1506_v4  ;;  %v1343_v56 = vadd.f32 %v2346_v48, %v2018_v26 }
 0x8bb   :  { %v1334_v63 = vpop.f32.mrf.mxu0 }
 0x8bc   :  { %v1335_v61 = vadd.f32 %v2018_v26, %v1334_v63  ;;  %v1355_v13 = vmax.f32 %v1343_v56, 0.0 }
 0x8bd   :  { %v2347_v41 = vpop.f32.mrf.mxu0 }
 0x8be   :  { %v1346_v54 = vadd.f32 %v2347_v41, %v2018_v26  ;;  %v1353_v11 = vmax.f32 %v1335_v61, 0.0 }
 0x8bf   :  { %v1337_v7 = vpop.f32.mrf.mxu0 }
 0x8c0   :  { %v1338_v8 = vadd.f32 %v2018_v26, %v1337_v7  ;;  %v1356_v10 = vmax.f32 %v1346_v54, 0.0 }
 0x8c2   :  { %v1354_v12 = vmax.f32 %v1338_v8, 0.0  ;;  %v1360_v15 = vpack.c.bf16 %v1356_v10, %v1355_v13 }
 0x8c4   :  { %v1359_v14 = vpack.c.bf16 %v1354_v12, %v1353_v11 }
 0x8c6   :  { %2368 = vmatprep.mubr.bf16.mxu1 %v1359_v14 }
 0x8c7   :  { %2369 = vmatmul.mubr.bf16.gmra.mxu1 %v1360_v15 }
 0x8c8   :  { %2404 = vmatprep.mubr.msk.f32.mxu1 %vm2707_vm1, %v3414_v36 }
 0x97a   :  { %v2382_v30 = vpop.f32.mrf.mxu0 }
 0x97b   :  { %v1604_v62 = vadd.f32 %v2382_v30, %v2036_v43 }
 0x97c   :  { %v1595_v31 = vpop.f32.mrf.mxu0 }
 0x97d   :  { %v2047_v55 = vmul.f32 -1.442695, %v1604_v62 }
 0x97e   :  { %v2383_v32 = vpop.f32.mrf.mxu0 }
 0x97f   :  { %v1607_v53 = vadd.f32 %v2383_v32, %v2036_v43  ;;  %v1680_v32 = vld [vmem:[%s3403_s12 + $0x28] sm:$0xff] }
 0x980   :  { %v1598_v40 = vpop.f32.mrf.mxu0 }
 0x981   :  { %v2048_v0 = vmul.f32 -1.442695, %v1607_v53  ;;  %v1599_v6 = vadd.f32 %v2036_v43, %v1598_v40  ;;  %v1679_v40 = vld [vmem:[%s3403_s12 + $0x20] sm:$0xff] }
 0x983   :  { %v2046_v44 = vmul.f32 -1.442695, %v1599_v6 }
 0x987   :  { %v2370_v37 = vpop.f32.mrf.mxu1 }
 0x988   :  { %v1491_v21 = vadd.f32 %v2370_v37, %v2027_v3 }
 0x989   :  { %v1482_v17 = vpop.f32.mrf.mxu1 }
 0x98a   :  { %v1483_v19 = vadd.f32 %v2027_v3, %v1482_v17  ;;  %v1503_v27 = vmax.f32 %v1491_v21, 0.0 }
 0x98b   :  { %v2371_v18 = vpop.f32.mrf.mxu1 }
 0x98c   :  { %v1494_v20 = vadd.f32 %v2371_v18, %v2027_v3  ;;  %v1501_v25 = vmax.f32 %v1483_v19, 0.0 }
 0x98d   :  { %v1485_v22 = vpop.f32.mrf.mxu1 }
 0x98e   :  { %v1486_v42 = vadd.f32 %v2027_v3, %v1485_v22  ;;  %v1504_v24 = vmax.f32 %v1494_v20, 0.0  ;;  %v1596_v3 = vadd.f32 %v2036_v43, %v1595_v31 }
 0x990   :  { %v1502_v26 = vmax.f32 %v1486_v42, 0.0  ;;  %v1508_v29 = vpack.c.bf16 %v1504_v24, %v1503_v27  ;;  %v2045_v58 = vmul.f32 -1.442695, %v1596_v3  ;;  %v1674_v42 = vld [vmem:[%s3402_s11] sm:$0xff]  ;;  %v1681_v27 = vld [vmem:[%s3403_s12 + $0x30] sm:$0xff] }
 0x992   :  { %v1507_v28 = vpack.c.bf16 %v1502_v26, %v1501_v25  ;;  %v1682_v25 = vld [vmem:[%s3403_s12 + $0x38] sm:$0xff] }
 0x994   :  { %2384 = vmatprep.mubr.msk.bf16.mxu0 %vm1548_vm2, %v1507_v28 }
 0x995   :  { %2385 = vmatmul.mubr.msk.bf16.gmra.mxu0 %vm1548_vm2, %v1508_v29 }
 0x996   :  { %2423 = vmatprep.mubr.msk.f32.mxu0 %vm2707_vm1, %v3414_v36 }
 0xa55   :  { %v2386_v46 = vpop.f32.mrf.mxu0 }
 0xa56   :  { %v1620_v45 = vadd.f32 %v2386_v46, %v2036_v43 }
 0xa57   :  { %v1611_v5 = vpop.f32.mrf.mxu0 }
 0xa58   :  { %v1612_v2 = vadd.f32 %v2036_v43, %v1611_v5  ;;  %v2051_v52 = vmul.f32 -1.442695, %v1620_v45  ;;  %v1678_v5 = vld [vmem:[%s3403_s12 + $0x18] sm:$0xff] }
 0xa59   :  { %v2387_v60 = vpop.f32.mrf.mxu0 }
 0xa5a   :  { %v1623_v39 = vadd.f32 %v2387_v60, %v2036_v43  ;;  %v2049_v16 = vmul.f32 -1.442695, %v1612_v2  ;;  %2578 = vpow2.f32 %v2051_v52  ;;  %v1677_v52 = vld [vmem:[%s3403_s12 + $0x10] sm:$0xff] }
 0xa5b   :  { %v1614_v59 = vpop.f32.mrf.mxu0 }
 0xa5c   :  { %v2052_v9 = vmul.f32 -1.442695, %v1623_v39  ;;  %v1615_v23 = vadd.f32 %v2036_v43, %v1614_v59  ;;  %v1676_v39 = vld [vmem:[%s3403_s12 + $0x8] sm:$0xff]  ;;  %v1675_v59 = vld [vmem:[%s3403_s12] sm:$0xff]  ;;  %s2709_s12 = smov [#allocation8]  }
 0xa5d   :  { %s1948_s3 = sshll.u32 %s2709_s12, 4  ;;  %s1949_s3 = int_to_ptr.vmem [resolvable:$true] %s1948_s3 }
 0xa5e   :  { %2580 = vpow2.f32 %v2052_v9  ;;  %v2050_v50 = vmul.f32 -1.442695, %v1615_v23  ;;  %s2653_s22 = scalar_lea.vmem %s1949_s3, 128  ;;  %p2658_p11 = scmp.lt.s32.totalorder %s1949_s3, %s1949_s3 }
 0xa5f   :  { %2582 = vpow2.f32 %v2049_v16  ;;  %p2654_p10 = scmp.ne.s32.totalorder %s1949_s3, %s2653_s22  ;;  %p2659_p12 = scmp.lt.s32.totalorder %s2653_s22, %s2653_s22 }
 0xa60   :  { %2584 = vpow2.f32 %v2050_v50 }
 0xa61   :  { %2586 = vpow2.f32 %v2048_v0  ;;  %p2660_p13 = por %p2659_p12, %p2658_p11 }
 0xa62   :  { %2588 = vpow2.f32 %v2047_v55 }
 0xa63   :  { %2590 = vpow2.f32 %v2046_v44  ;;  %p2661_p0 = pnand %p2660_p13, %p2654_p10 }
 0xa64   :  { %2592 = vpow2.f32 %v2045_v58 }
 0xa67   :  { %v2579_v47 = vpop.eup %2578 }
 0xa68   :  { %v1656_v34 = vadd.f32 1.0, %v2579_v47 }
 0xa6b   :  { %v2581_v49 = vpop.eup %2580 }
 0xa6c   :  { %v2583_v35 = vpop.eup %2582  ;;  %v1657_v51 = vadd.f32 1.0, %v2581_v49 }
 0xa6d   :  { %v2585_v33 = vpop.eup %2584  ;;  %v1654_v38 = vadd.f32 1.0, %v2583_v35 }
 0xa6e   :  { %2594 = vrcp.f32 %v1657_v51  ;;  %v1655_v57 = vadd.f32 1.0, %v2585_v33  ;;  %v2587_v1 = vpop.eup %2586 }
 0xa6f   :  { %v2589_v4 = vpop.eup %2588  ;;  %v1653_v48 = vadd.f32 1.0, %v2587_v1 }
 0xa70   :  { %2596 = vrcp.f32 %v1655_v57  ;;  %v2591_v63 = vpop.eup %2590  ;;  %v1652_v41 = vadd.f32 1.0, %v2589_v4 }
 0xa71   :  { %2598 = vrcp.f32 %v1656_v34  ;;  %v2593_v61 = vpop.eup %2592  ;;  %v1651_v54 = vadd.f32 1.0, %v2591_v63 }
 0xa72   :  { %2600 = vrcp.f32 %v1654_v38  ;;  %v1650_v56 = vadd.f32 1.0, %v2593_v61 }
 0xa73   :  { %2602 = vrcp.f32 %v1653_v48 }
 0xa74   :  { %2604 = vrcp.f32 %v1652_v41 }
 0xa75   :  { %2606 = vrcp.f32 %v1651_v54 }
 0xa76   :  { %2608 = vrcp.f32 %v1650_v56 }
 0xa7b   :  { %v2595_v7 = vpop.eup %2594 }
 0xa7c   :  { %1818 = vrot.lane.b32.xlu0 %v2595_v7, %s2708_s10 }
 0xa7d   :  { %v2597_v8 = vpop.eup %2596 }
 0xa7e   :  { %1814 = vrot.lane.b32.xlu1 %v2597_v8, %s2708_s10  ;;  %v2599_v10 = vpop.eup %2598 }
 0xa7f   :  { %v2601_v11 = vpop.eup %2600 }
 0xa80   :  { %1816 = vrot.lane.b32.xlu0 %v2599_v10, %s2708_s10  ;;  %v2603_v12 = vpop.eup %2602 }
 0xa81   :  { %v2605_v13 = vpop.eup %2604 }
 0xa82   :  { %1812 = vrot.lane.b32.xlu1 %v2601_v11, %s2708_s10  ;;  %v2607_v14 = vpop.eup %2606 }
 0xa83   :  { %v2609_v15 = vpop.eup %2608 }
 0xa84   :  { %1810 = vrot.lane.b32.xlu0 %v2603_v12, %s2708_s10 }
 0xa86   :  { %1808 = vrot.lane.b32.xlu1 %v2605_v13, %s2708_s10 }
 0xa88   :  { %1806 = vrot.lane.b32.xlu0 %v2607_v14, %s2708_s10 }
 0xa8a   :  { %1804 = vrot.lane.b32.xlu1 %v2609_v15, %s2708_s10 }
 0xa8c   :  { %1720 = vperm.xlu0 %2436, %v2595_v7  }
 0xa8e   :  { %1715 = vperm.xlu1 %2437, %v2599_v10  }
 0xa90   :  { %1705 = vperm.xlu0 %2436, %v2601_v11  }
 0xa92   :  { %1710 = vperm.xlu1 %2437, %v2597_v8  }
 0xa94   :  { %1695 = vperm.xlu0 %2436, %v2605_v13  }
 0xa96   :  { %1700 = vperm.xlu1 %2437, %v2603_v12  }
 0xa98   :  { %1685 = vperm.xlu0 %2436, %v2609_v15  }
 0xa9a   :  { %1690 = vperm.xlu1 %2437, %v2607_v14  }
 0xaee   :  { %v1819_v37 = vpop.permute.xlu0 %1818 }
 0xaef   :  { %2408 = vmatpush3.msra.mxu0 %v1819_v37 }
 0xaf0   :  { %v1815_v17 = vpop.permute.xlu1 %1814  ;;  %2409 = vmatprep.subr.mxu0 %v3414_v36 }
 0xaf2   :  { %v1817_v18 = vpop.permute.xlu0 %1816 }
 0xaf3   :  { %2410 = vmatpush3.msra.mxu0 %v1817_v18 }
 0xaf4   :  { %2411 = vmatprep.subr.mxu0 %v3414_v36  ;;  %v1813_v19 = vpop.permute.xlu1 %1812 }
 0xaf5   :  { %2412 = vmatpush3.msra.mxu0 %v1815_v17 }
 0xaf6   :  { %v1811_v20 = vpop.permute.xlu0 %1810  ;;  %2413 = vmatprep.subr.mxu0 %v3414_v36 }
 0xaf7   :  { %2414 = vmatpush3.msra.mxu0 %v1813_v19 }
 0xaf8   :  { %2415 = vmatprep.subr.mxu0 %v3414_v36  ;;  %v1809_v21 = vpop.permute.xlu1 %1808 }
 0xaf9   :  { %2416 = vmatpush3.msra.mxu0 %v1811_v20 }
 0xafa   :  { %2417 = vmatprep.subr.mxu0 %v3414_v36  ;;  %v1807_v22 = vpop.permute.xlu0 %1806 }
 0xafb   :  { %2418 = vmatpush3.msra.mxu0 %v1809_v21 }
 0xafc   :  { %2419 = vmatprep.subr.mxu0 %v3414_v36  ;;  %v1805_v24 = vpop.permute.xlu1 %1804 }
 0xafd   :  { %2420 = vmatpush3.msra.mxu0 %v1807_v22 }
 0xafe   :  { %2421 = vmatprep.subr.mxu0 %v3414_v36 }
 0xaff   :  { %2422 = vmatpush3.msra.mxu0 %v1805_v24 }
 0xb00   :  { %2424 = vmatmul.mubr.msk.f32.vlgmr.msra.gmra.mxu0 %vm1548_vm2, %v1674_v42 }
 0xb07   :  { %v1721_v26 = vpop.permute.xlu0 %1720 }
 0xb08   :  { %v1730_v28 = vmul.f32 %v1721_v26, %v1682_v25 }
 0xb09   :  { %v1716_v29 = vpop.permute.xlu1 %1715 }
 0xb0a   :  { %v1729_v30 = vmul.f32 %v1716_v29, %v1681_v27  ;;  %2389 = vmatpush3.msra.mxu1 %v1730_v28 }
 0xb0b   :  { %2390 = vmatprep.subr.mxu1 %v3414_v36  ;;  %v1706_v31 = vpop.permute.xlu0 %1705 }
 0xb0c   :  { %2391 = vmatpush3.msra.mxu1 %v1729_v30  ;;  %v1727_v2 = vmul.f32 %v1706_v31, %v1679_v40 }
 0xb0d   :  { %v1711_v43 = vpop.permute.xlu1 %1710  ;;  %2392 = vmatprep.subr.mxu1 %v3414_v36 }
 0xb0e   :  { %v1728_v46 = vmul.f32 %v1711_v43, %v1680_v32 }
 0xb0f   :  { %v1696_v45 = vpop.permute.xlu0 %1695 }
 0xb10   :  { %2393 = vmatpush3.msra.mxu1 %v1728_v46  ;;  %v1725_v16 = vmul.f32 %v1696_v45, %v1677_v52 }
 0xb11   :  { %2394 = vmatprep.subr.mxu1 %v3414_v36  ;;  %v1701_v60 = vpop.permute.xlu1 %1700 }
 0xb12   :  { %v1726_v53 = vmul.f32 %v1701_v60, %v1678_v5  ;;  %2395 = vmatpush3.msra.mxu1 %v1727_v2 }
 0xb13   :  { %2396 = vmatprep.subr.mxu1 %v3414_v36  ;;  %v1686_v62 = vpop.permute.xlu0 %1685 }
 0xb14   :  { %2397 = vmatpush3.msra.mxu1 %v1726_v53  ;;  %v1723_v0 = vmul.f32 %v1686_v62, %v1675_v59 }
 0xb15   :  { %2398 = vmatprep.subr.mxu1 %v3414_v36  ;;  %v1691_v9 = vpop.permute.xlu1 %1690 }
 0xb16   :  { %v1724_v23 = vmul.f32 %v1691_v9, %v1676_v39  ;;  %2399 = vmatpush3.msra.mxu1 %v1725_v16 }
 0xb17   :  { %2400 = vmatprep.subr.mxu1 %v3414_v36 }
 0xb18   :  { %2401 = vmatpush3.msra.mxu1 %v1724_v23 }
 0xb19   :  { %2402 = vmatprep.subr.mxu1 %v3414_v36 }
 0xb1a   :  { %2403 = vmatpush3.msra.mxu1 %v1723_v0 }
 0xb1b   :  { %2405 = vmatmul.mubr.msk.f32.vlgmr.msra.gmra.mxu1 %vm1548_vm2, %v1674_v42 }
 0xbc0   :  { %v1894_v6 = vpop.f32.mrf.mxu0 }
 0xbc1   :  { %v1898_v50 = vmul.f32 0.25, %v1894_v6 }
 0xbc2   :  { %v2425_v55 = vpop.f32.mrf.mxu0 }
 0xbc3   :  { %v1899_v3 = vsub.f32 1.0, %v1898_v50 }
 0xbc5   :  { %1902 = vperm.xlu1 %2437, %v1899_v3  }
 0xbdb   :  { %v1800_v44 = vpop.f32.mrf.mxu1 }
 0xbdd   :  { %v2406_v58 = vpop.f32.mrf.mxu1 }
 0xc40   :  { %v1903_v47 = vpop.permute.xlu1 %1902 }
 0xc41   :  { %v1905_v49 = vmul.f32 %v1903_v47, %v1800_v44 }
 0xc43   :  { %1920 = vadd.xlane.f32.xlu0 %v1905_v49 }
 0xccc   :  { %v1921_v35 = vpop.xlane.xlu0 %1920 }
 0xccd   :  { %v1922_v51 = vadd.f32 %v1921_v35, %v1898_v50 }
 0xccf   :  { %v1923_v33 = vadd.f32 1e-10, %v1922_v51 }
 0xcd1   :  { %1926 = vperm.xlu1 %2437, %v1923_v33  }
 0xcd5   :  { %1915 = vperm.xlu1 %2437, %v1898_v50  }
 0xcd6   :  { %2664 = shalt.err (!%p2661_p0)
}
 0xcd7   :  { %1951 = dma.vmem_to_hbm [thread:$0]  %s1949_s3, 128, %s3406_s15, [#allocation9]   ;;  %v2055_v34 = vld [vmem:[%s3404_s13] ss:$0 sm:$0xff] }
 0xcd8   :  { %s2710_s8 = smov [#allocation7]  }
 0xcd9   :  { %s1938_s9 = sshll.u32 %s2710_s8, 4  ;;  %s1939_s9 = int_to_ptr.vmem [resolvable:$true] %s1938_s9 }
 0xcda   :  { %s2673_s10 = scalar_lea.vmem %s1939_s9, 128  ;;  %p2678_p2 = scmp.lt.s32.totalorder %s1939_s9, %s1939_s9 }
 0xcdb   :  { %p2674_p1 = scmp.ne.s32.totalorder %s1939_s9, %s2673_s10  ;;  %p2679_p3 = scmp.lt.s32.totalorder %s2673_s10, %s2673_s10 }
 0xcdd   :  { %p2680_p4 = por %p2679_p3, %p2678_p2 }
 0xcdf   :  { %p2681_p5 = pnand %p2680_p4, %p2674_p1 }
 0xd4c   :  { %v1927_v36 = vpop.permute.xlu1 %1926 }
 0xd4d   :  { %2610 = vrcp.f32 %v1927_v36 }
 0xd50   :  { %v1916_v57 = vpop.permute.xlu1 %1915 }
 0xd51   :  { %v1918_v1 = vmul.f32 %v2055_v34, %v1916_v57 }
 0xd53   :  { %v1919_v38 = vadd.f32 %v1918_v1, %v1905_v49 }
 0xd5a   :  { %v2611_v4 = vpop.eup %2610 }
 0xd5b   :  { %v1930_v48 = vmul.f32 %v2611_v4, %v1919_v38 }
 0xd5d   :  { %1931 = vst [vmem:[#allocation7] sm:$0xff] %v1930_v48 }
 0xd5e   :  { %2684 = shalt.err (!%p2681_p5)
}
 0xd5f   :  { %1941 = dma.vmem_to_hbm [thread:$0]  %s1939_s9, 128, %s3405_s14, [#allocation4]  }
 0xd60   :  { %2697 = dma.done.wait [#allocation4], 128  }
 0xd61   :  { %2698 = vsyncadd [#allocation4], 4294967168 }
 0xd62   :  { %2699 = dma.done.wait [#allocation9], 128  }
 0xd63   :  { %2700 = vsyncadd [#allocation9], 4294967168 }
 0xd64   :  { %1958 = vsyncpa [#allocation3], 1 }
 0xd65   :  { %1959 = vsyncpa [#allocation6], 1 }
 0xd66   :  { %1960 = vsyncpa [#allocation4], 1 }
 0xd67   :  { %1961 = vsyncpa [#allocation9], 1 }

</bundles_post_ra>
